<compile_context>
chip_gen: v6e
topology: v6e:2x2x1
jax: 0.10.0
libtpu: 0.0.40
codegen_flags: <defaults>
</compile_context>

<pallas_src>
import functools

import jax
import jax.numpy as jnp
from jax.experimental import pallas as pl
from jax.experimental.pallas import tpu as pltpu


def _round_up(n, m):
    return (n + m - 1) // m * m


def _pad_last(x, target, fill=0.0):
    pad = target - x.shape[-1]
    if pad == 0:
        return x
    widths = [(0, 0)] * (x.ndim - 1) + [(0, pad)]
    return jnp.pad(x, widths, constant_values=fill)


def _attn_decoder_kernel(n_layers, num_steps,
                         emb_ref,        # [T, H]    bf16  pre-gathered embedding rows
                         hid0_ref,       # [1, H]    f32
                         enc_ref,        # [Lp, H]   bf16
                         w_attn_e_ref,   # [H, Lp]   bf16
                         w_attn_h_ref,   # [H, Lp]   bf16
                         b_attn_ref,     # [1, Lp]   f32  (pad lanes = -1e30)
                         w_comb_e_ref,   # [H, H]    bf16
                         w_comb_a_ref,   # [H, H]    bf16
                         b_comb_ref,     # [1, H]    f32
                         w_ih_ref,       # [3, H, H] bf16  gates (r, z, n)
                         w_hh_ref,       # [3, H, H] bf16
                         b_ih_ref,       # [3, 1, H] f32
                         b_hh_ref,       # [3, 1, H] f32
                         w_out_ref,      # [H, Op]   bf16
                         b_out_ref,      # [1, Op]   f32  (pad lanes = -1e30)
                         logp_ref,       # [T, Op]   f32  out
                         hid_out_ref,    # [1, H]    f32  out
                         attn_ref,       # [T, Lp]   f32  out
                         h_all_sc,       # [T, H]    f32  scratch (per-step hidden)
                         attn_e_sc,      # [T, Lp]   f32  scratch (emb @ w_attn_e + b)
                         comb_e_sc):     # [T, H]    f32  scratch (emb @ w_comb_e + b)
    T = num_steps
    f32, bf16 = jnp.float32, jnp.bfloat16

    # TODO(synk): nn.Dropout(0.1) in training mode is not modeled (eval-mode identity).

    # ---- batched embedding-side projections for all T steps (M = T on MXU) ----
    emb = emb_ref[...]                                                    # [T, H] bf16
    attn_e_sc[...] = (jnp.dot(emb, w_attn_e_ref[...], preferred_element_type=f32)
                      + b_attn_ref[...])                                  # [T, Lp]
    comb_e_sc[...] = (jnp.dot(emb, w_comb_e_ref[...], preferred_element_type=f32)
                      + b_comb_ref[...])                                  # [T, H]

    # ---- sequential recurrence over T timesteps (hidden carried in f32) ----
    def step(t, h):                                                       # h: [1, H] f32
        h_bf = h.astype(bf16)
        # attn_weights = softmax(Linear(cat(embedded, hidden)))  (split-weight form)
        logits = (attn_e_sc[pl.ds(t, 1), :]
                  + jnp.dot(h_bf, w_attn_h_ref[...], preferred_element_type=f32))
        m = jnp.max(logits, axis=-1, keepdims=True)
        e = jnp.exp(logits - m)
        attn_w = e / jnp.sum(e, axis=-1, keepdims=True)   # exact (user-visible output)
        attn_ref[pl.ds(t, 1), :] = attn_w

        # attn_applied = attn_weights @ encoder_outputs (padded rows contribute 0)
        attn_applied = jnp.dot(attn_w.astype(bf16), enc_ref[...],
                               preferred_element_type=f32)                # [1, H]
        # attn_combine(cat(embedded, attn_applied))
        x = (comb_e_sc[pl.ds(t, 1), :]
             + jnp.dot(attn_applied.astype(bf16), w_comb_a_ref[...],
                       preferred_element_type=f32))                       # [1, H]

        # n_layers x (relu + GRU cell); the module re-applies the same GRU weights.
        for _ in range(n_layers):                # static unroll (Python int)
            xi = jnp.maximum(x, 0.0).astype(bf16)
            hg = h.astype(bf16)
            r = jax.nn.sigmoid(
                jnp.dot(xi, w_ih_ref[0], preferred_element_type=f32) + b_ih_ref[0]
                + jnp.dot(hg, w_hh_ref[0], preferred_element_type=f32) + b_hh_ref[0])
            z = jax.nn.sigmoid(
                jnp.dot(xi, w_ih_ref[1], preferred_element_type=f32) + b_ih_ref[1]
                + jnp.dot(hg, w_hh_ref[1], preferred_element_type=f32) + b_hh_ref[1])
            hn = jnp.dot(hg, w_hh_ref[2], preferred_element_type=f32) + b_hh_ref[2]
            n = jnp.tanh(
                jnp.dot(xi, w_ih_ref[2], preferred_element_type=f32) + b_ih_ref[2]
                + r * hn)
            h = (1.0 - z) * n + z * h
            x = h

        h_all_sc[pl.ds(t, 1), :] = h
        return h

    h_final = jax.lax.fori_loop(0, T, step, hid0_ref[...], unroll=True)
    hid_out_ref[...] = h_final               # single store, after the last step only

    # ---- batched output projection + row-wise log_softmax for all T steps ----
    out_logits = (jnp.dot(h_all_sc[...].astype(bf16), w_out_ref[...],
                          preferred_element_type=f32)
                  + b_out_ref[...])                                       # [T, Op]
    mo = jnp.max(out_logits, axis=-1, keepdims=True)
    eo = jnp.exp(out_logits - mo)
    logp_ref[...] = out_logits - mo - jnp.log(jnp.sum(eo, axis=-1, keepdims=True))


def attn_decoder_forward(params, token_ids, hidden, encoder_outputs, *, n_layers=1):
    """Runs T teacher-forced decode steps of AttnDecoderRNN in one pallas_call.

    token_ids:       int scalar or [T] int array (input token per step).
    hidden:          [1, 1, H] float32 initial hidden state.
    encoder_outputs: [max_length, H] float32.
    Returns (log_probs [T, O], hidden [1, 1, H], attn_weights [T, max_length]).
    With T == 1 this is exactly AttnDecoderRNN.forward.
    """
    token_ids = jnp.atleast_1d(jnp.asarray(token_ids, dtype=jnp.int32))
    T = int(token_ids.shape[0])
    H = params["w_comb"].shape[1]
    L = encoder_outputs.shape[0]
    O = params["w_out"].shape[1]
    Lp = _round_up(L, 128)   # lane-dense attention logits / weights
    Op = _round_up(O, 128)   # lane-dense output logits

    f32, bf16 = jnp.float32, jnp.bfloat16
    NEG = -1e30              # f32 bias padding: exp() underflows to exactly 0
                             # (do NOT switch biases to fp16: -1e30 would overflow)

    # Pre-gather embedding rows: one resident [T, H] buffer, no per-step DMAs.
    emb_all = params["embedding"].astype(bf16)[token_ids]                 # [T, H]

    # Weight prep: bf16 storage, pre-split cat-Linear weights, per-gate GRU
    # weights, lane padding.
    w_attn = params["w_attn"].astype(f32)
    w_attn_e = _pad_last(w_attn[:H], Lp).astype(bf16)                     # [H, Lp]
    w_attn_h = _pad_last(w_attn[H:], Lp).astype(bf16)                     # [H, Lp]
    b_attn = _pad_last(params["b_attn"].astype(f32), Lp, fill=NEG)        # [1, Lp]
    w_comb = params["w_comb"].astype(f32)
    w_comb_e = w_comb[:H].astype(bf16)                                    # [H, H]
    w_comb_a = w_comb[H:].astype(bf16)                                    # [H, H]
    b_comb = params["b_comb"].astype(f32)                                 # [1, H]
    w_ih = params["w_ih"].astype(f32)                                     # [H, 3H]
    w_hh = params["w_hh"].astype(f32)
    w_ih_g = jnp.stack([w_ih[:, :H], w_ih[:, H:2 * H], w_ih[:, 2 * H:]]).astype(bf16)
    w_hh_g = jnp.stack([w_hh[:, :H], w_hh[:, H:2 * H], w_hh[:, 2 * H:]]).astype(bf16)
    b_ih = params["b_ih"].astype(f32)
    b_hh = params["b_hh"].astype(f32)
    b_ih_g = jnp.stack([b_ih[:, :H], b_ih[:, H:2 * H], b_ih[:, 2 * H:]])  # [3,1,H]
    b_hh_g = jnp.stack([b_hh[:, :H], b_hh[:, H:2 * H], b_hh[:, 2 * H:]])  # [3,1,H]
    w_out = _pad_last(params["w_out"].astype(f32), Op).astype(bf16)       # [H, Op]
    b_out = _pad_last(params["b_out"].astype(f32), Op, fill=NEG)          # [1, Op]

    enc = jnp.pad(encoder_outputs.astype(f32), ((0, Lp - L), (0, 0))).astype(bf16)
    hid2d = hidden.reshape(1, H).astype(f32)

    vmem = pl.BlockSpec(memory_space=pltpu.MemorySpace.VMEM)   # whole array, resident
    kernel = functools.partial(_attn_decoder_kernel, n_layers, T)

    logp_p, h_new, attn_p = pl.pallas_call(
        kernel,
        out_shape=[jax.ShapeDtypeStruct((T, Op), f32),
                   jax.ShapeDtypeStruct((1, H), f32),
                   jax.ShapeDtypeStruct((T, Lp), f32)],
        in_specs=[vmem] * 15,
        out_specs=[vmem] * 3,
        scratch_shapes=[pltpu.VMEM((T, H), f32),     # per-step hidden states
                        pltpu.VMEM((T, Lp), f32),    # batched emb @ w_attn_e + b
                        pltpu.VMEM((T, H), f32)],    # batched emb @ w_comb_e + b
    )(emb_all, hid2d, enc,
      w_attn_e, w_attn_h, b_attn,
      w_comb_e, w_comb_a, b_comb,
      w_ih_g, w_hh_g, b_ih_g, b_hh_g,
      w_out, b_out)

    logp = logp_p[:, :O]
    attn_w = attn_p[:, :L]
    return logp, h_new.reshape(1, 1, H), attn_w


# ----------------------------- pure-JAX reference -----------------------------

def _reference_step(params, token_id, hidden, encoder_outputs, n_layers=1):
    emb = params["embedding"][token_id][None, :]
    h = hidden.reshape(1, -1)
    H = h.shape[1]
    cat1 = jnp.concatenate([emb, h], axis=1)
    attn_w = jax.nn.softmax(cat1 @ params["w_attn"] + params["b_attn"], axis=-1)
    applied = attn_w @ encoder_outputs
    cat2 = jnp.concatenate([emb, applied], axis=1)
    x = cat2 @ params["w_comb"] + params["b_comb"]
    for _ in range(n_layers):
        xi = jnp.maximum(x, 0.0)
        gi = xi @ params["w_ih"] + params["b_ih"]
        gh = h @ params["w_hh"] + params["b_hh"]
        r = jax.nn.sigmoid(gi[:, :H] + gh[:, :H])
        z = jax.nn.sigmoid(gi[:, H:2 * H] + gh[:, H:2 * H])
        n = jnp.tanh(gi[:, 2 * H:] + r * gh[:, 2 * H:])
        h = (1.0 - z) * n + z * h
        x = h
    logp = jax.nn.log_softmax(h @ params["w_out"] + params["b_out"], axis=-1)
    return logp, h.reshape(1, 1, H), attn_w


def _reference_multi(params, token_ids, hidden, encoder_outputs, n_layers=1):
    logps, attns = [], []
    h = hidden
    for tok in token_ids:
        logp, h, aw = _reference_step(params, int(tok), h, encoder_outputs, n_layers)
        logps.append(logp)
        attns.append(aw)
    return jnp.concatenate(logps, 0), h, jnp.concatenate(attns, 0)


def _init_params(key, hidden_size, output_size, max_length):
    H, O, L = hidden_size, output_size, max_length
    ks = jax.random.split(key, 11)
    s = 0.1
    return {
        "embedding": s * jax.random.normal(ks[0], (O, H), jnp.float32),
        "w_attn":    s * jax.random.normal(ks[1], (2 * H, L), jnp.float32),
        "b_attn":    s * jax.random.normal(ks[2], (1, L), jnp.float32),
        "w_comb":    s * jax.random.normal(ks[3], (2 * H, H), jnp.float32),
        "b_comb":    s * jax.random.normal(ks[4], (1, H), jnp.float32),
        "w_ih":      s * jax.random.normal(ks[5], (H, 3 * H), jnp.float32),
        "w_hh":      s * jax.random.normal(ks[6], (H, 3 * H), jnp.float32),
        "b_ih":      s * jax.random.normal(ks[7], (1, 3 * H), jnp.float32),
        "b_hh":      s * jax.random.normal(ks[8], (1, 3 * H), jnp.float32),
        "w_out":     s * jax.random.normal(ks[9], (H, O), jnp.float32),
        "b_out":     s * jax.random.normal(ks[10], (1, O), jnp.float32),
    }


if __name__ == "__main__":
    hidden_size, output_size, max_length = 32, 16, 16
    key = jax.random.PRNGKey(0)
    pkey, hkey, ekey = jax.random.split(key, 3)

    params = _init_params(pkey, hidden_size, output_size, max_length)
    hidden0 = 0.1 * jax.random.normal(hkey, (1, 1, hidden_size), jnp.float32)
    encoder_outputs = 0.1 * jax.random.normal(
        ekey, (max_length, hidden_size), jnp.float32)

    # Reference uses the bf16-rounded weights the kernel consumes
    # (reference activations stay f32; the kernel feeds bf16 to the MXU,
    # hence the slightly looser tolerances below).
    qparams = {k: (v.astype(jnp.bfloat16).astype(jnp.float32)
                   if k in ("embedding", "w_attn", "w_comb", "w_ih", "w_hh", "w_out")
                   else v)
               for k, v in params.items()}

    # --- fused multi-step decode (T=4 timesteps in one pallas_call) ---------
    token_ids = jnp.array([3, 7, 1, 12], dtype=jnp.int32)
    logp, h_new, attn_w = attn_decoder_forward(
        params, token_ids, hidden0, encoder_outputs, n_layers=1)
    jax.block_until_ready((logp, h_new, attn_w))

    logp_r, h_r, attn_r = _reference_multi(
        qparams, [int(t) for t in token_ids], hidden0, encoder_outputs, 1)
    assert logp.shape == (4, output_size)
    assert h_new.shape == (1, 1, hidden_size)
    assert attn_w.shape == (4, max_length)
    assert jnp.allclose(logp, logp_r, atol=1e-2, rtol=1e-2), "log_softmax mismatch"
    assert jnp.allclose(h_new, h_r, atol=1e-2, rtol=1e-2), "hidden mismatch"
    assert jnp.allclose(attn_w, attn_r, atol=3e-3, rtol=3e-3), "attention mismatch"

    # --- single step: exactly AttnDecoderRNN.forward ------------------------
    logp1, h1, aw1 = attn_decoder_forward(
        params, 5, hidden0, encoder_outputs, n_layers=1)
    jax.block_until_ready((logp1, h1, aw1))
    logp1_r, h1_r, aw1_r = _reference_step(qparams, 5, hidden0, encoder_outputs, 1)
    assert logp1.shape == (1, output_size)
    assert h1.shape == (1, 1, hidden_size)
    assert aw1.shape == (1, max_length)
    assert jnp.allclose(logp1, logp1_r, atol=1e-2, rtol=1e-2), "step logp mismatch"
    assert jnp.allclose(h1, h1_r, atol=1e-2, rtol=1e-2), "step hidden mismatch"
    assert jnp.allclose(aw1, aw1_r, atol=3e-3, rtol=3e-3), "step attention mismatch"

    print("KERNEL_OK")
</pallas_src>

<mosaic_0001>
module attributes {stable_mosaic.version = 11 : i64} {
  func.func @_attn_decoder_kernel(%arg0: memref<4x32xbf16, #tpu.memory_space<vmem>>, %arg1: memref<1x32xf32, #tpu.memory_space<vmem>>, %arg2: memref<128x32xbf16, #tpu.memory_space<vmem>>, %arg3: memref<32x128xbf16, #tpu.memory_space<vmem>>, %arg4: memref<32x128xbf16, #tpu.memory_space<vmem>>, %arg5: memref<1x128xf32, #tpu.memory_space<vmem>>, %arg6: memref<32x32xbf16, #tpu.memory_space<vmem>>, %arg7: memref<32x32xbf16, #tpu.memory_space<vmem>>, %arg8: memref<1x32xf32, #tpu.memory_space<vmem>>, %arg9: memref<3x32x32xbf16, #tpu.memory_space<vmem>>, %arg10: memref<3x32x32xbf16, #tpu.memory_space<vmem>>, %arg11: memref<3x1x32xf32, #tpu.memory_space<vmem>>, %arg12: memref<3x1x32xf32, #tpu.memory_space<vmem>>, %arg13: memref<32x128xbf16, #tpu.memory_space<vmem>>, %arg14: memref<1x128xf32, #tpu.memory_space<vmem>>, %arg15: memref<4x128xf32, #tpu.memory_space<vmem>>, %arg16: memref<1x32xf32, #tpu.memory_space<vmem>>, %arg17: memref<4x128xf32, #tpu.memory_space<vmem>>, %arg18: memref<4x32xf32, #tpu.memory_space<vmem>>, %arg19: memref<4x128xf32, #tpu.memory_space<vmem>>, %arg20: memref<4x32xf32, #tpu.memory_space<vmem>>) attributes {dimension_semantics = [], scalar_prefetch = 0 : i64, scratch_operands = 3 : i64, tpu.core_type = #tpu.core_type<tc>} {
    %c0 = arith.constant 0 : index
    %c0_0 = arith.constant 0 : index
    %0 = vector.load %arg0[%c0, %c0_0] : memref<4x32xbf16, #tpu.memory_space<vmem>>, vector<4x32xbf16>
    %c0_1 = arith.constant 0 : index
    %c0_2 = arith.constant 0 : index
    %1 = vector.load %arg3[%c0_1, %c0_2] : memref<32x128xbf16, #tpu.memory_space<vmem>>, vector<32x128xbf16>
    %cst = arith.constant dense<0.000000e+00> : vector<4x128xf32>
    %2 = tpu.matmul %0, %1, %cst {dimension_numbers = #tpu.dot_dimension_numbers<[1], [0], [0], [1], [0, 0, 1, 1], [], []>} : vector<4x32xbf16>, vector<32x128xbf16>, vector<4x128xf32> -> vector<4x128xf32>
    %c0_3 = arith.constant 0 : index
    %c0_4 = arith.constant 0 : index
    %3 = vector.load %arg5[%c0_3, %c0_4] : memref<1x128xf32, #tpu.memory_space<vmem>>, vector<1x128xf32>
    %4 = vector.broadcast %3 : vector<1x128xf32> to vector<4x128xf32>
    %5 = arith.addf %2, %4 : vector<4x128xf32>
    %c0_5 = arith.constant 0 : index
    %c0_6 = arith.constant 0 : index
    %6 = vector.load %arg19[%c0_5, %c0_6] : memref<4x128xf32, #tpu.memory_space<vmem>>, vector<4x128xf32>
    tpu.vector_store %arg19[%c0_5, %c0_6], %5 {strides = array<i32>} : memref<4x128xf32, #tpu.memory_space<vmem>>, vector<4x128xf32>,
    %c0_7 = arith.constant 0 : index
    %c0_8 = arith.constant 0 : index
    %7 = vector.load %arg6[%c0_7, %c0_8] : memref<32x32xbf16, #tpu.memory_space<vmem>>, vector<32x32xbf16>
    %cst_9 = arith.constant dense<0.000000e+00> : vector<4x32xf32>
    %8 = tpu.matmul %0, %7, %cst_9 {dimension_numbers = #tpu.dot_dimension_numbers<[1], [0], [0], [1], [0, 0, 1, 1], [], []>} : vector<4x32xbf16>, vector<32x32xbf16>, vector<4x32xf32> -> vector<4x32xf32>
    %c0_10 = arith.constant 0 : index
    %c0_11 = arith.constant 0 : index
    %9 = vector.load %arg8[%c0_10, %c0_11] : memref<1x32xf32, #tpu.memory_space<vmem>>, vector<1x32xf32>
    %10 = vector.broadcast %9 : vector<1x32xf32> to vector<4x32xf32>
    %11 = arith.addf %8, %10 : vector<4x32xf32>
    %c0_12 = arith.constant 0 : index
    %c0_13 = arith.constant 0 : index
    %12 = vector.load %arg20[%c0_12, %c0_13] : memref<4x32xf32, #tpu.memory_space<vmem>>, vector<4x32xf32>
    tpu.vector_store %arg20[%c0_12, %c0_13], %11 {strides = array<i32>} : memref<4x32xf32, #tpu.memory_space<vmem>>, vector<4x32xf32>,
    %c0_14 = arith.constant 0 : index
    %c0_15 = arith.constant 0 : index
    %13 = vector.load %arg1[%c0_14, %c0_15] : memref<1x32xf32, #tpu.memory_space<vmem>>, vector<1x32xf32>
    %c0_i32 = arith.constant 0 : i32
    %14 = arith.truncf %13 : vector<1x32xf32> to vector<1x32xbf16>
    %15 = arith.index_cast %c0_i32 : i32 to index
    %c0_16 = arith.constant 0 : index
    %16 = vector.load %arg19[%15, %c0_16] : memref<4x128xf32, #tpu.memory_space<vmem>>, vector<1x128xf32>
    %c0_17 = arith.constant 0 : index
    %c0_18 = arith.constant 0 : index
    %17 = vector.load %arg4[%c0_17, %c0_18] : memref<32x128xbf16, #tpu.memory_space<vmem>>, vector<32x128xbf16>
    %cst_19 = arith.constant dense<0.000000e+00> : vector<1x128xf32>
    %18 = tpu.matmul %14, %17, %cst_19 {dimension_numbers = #tpu.dot_dimension_numbers<[1], [0], [0], [1], [0, 0, 1, 1], [], []>} : vector<1x32xbf16>, vector<32x128xbf16>, vector<1x128xf32> -> vector<1x128xf32>
    %19 = arith.addf %16, %18 : vector<1x128xf32>
    %cst_20 = arith.constant dense<0xFF800000> : vector<1xf32>
    %20 = vector.multi_reduction <maximumf>, %19, %cst_20 [1] : vector<1x128xf32> to vector<1xf32>
    %21 = vector.shape_cast %20 : vector<1xf32> to vector<1x1xf32>
    %22 = vector.broadcast %21 : vector<1x1xf32> to vector<1x128xf32>
    %23 = arith.subf %19, %22 : vector<1x128xf32>
    %24 = math.exp %23 : vector<1x128xf32>
    %cst_21 = arith.constant dense<0.000000e+00> : vector<1xf32>
    %25 = vector.multi_reduction <add>, %24, %cst_21 [1] : vector<1x128xf32> to vector<1xf32>
    %26 = vector.shape_cast %25 : vector<1xf32> to vector<1x1xf32>
    %27 = vector.broadcast %26 : vector<1x1xf32> to vector<1x128xf32>
    %28 = arith.divf %24, %27 : vector<1x128xf32>
    %29 = arith.index_cast %c0_i32 : i32 to index
    %c0_22 = arith.constant 0 : index
    %30 = vector.load %arg17[%29, %c0_22] : memref<4x128xf32, #tpu.memory_space<vmem>>, vector<1x128xf32>
    tpu.vector_store %arg17[%29, %c0_22], %28 {strides = array<i32>} : memref<4x128xf32, #tpu.memory_space<vmem>>, vector<1x128xf32>,
    %31 = arith.truncf %28 : vector<1x128xf32> to vector<1x128xbf16>
    %c0_23 = arith.constant 0 : index
    %c0_24 = arith.constant 0 : index
    %32 = vector.load %arg2[%c0_23, %c0_24] : memref<128x32xbf16, #tpu.memory_space<vmem>>, vector<128x32xbf16>
    %cst_25 = arith.constant dense<0.000000e+00> : vector<1x32xf32>
    %33 = tpu.matmul %31, %32, %cst_25 {dimension_numbers = #tpu.dot_dimension_numbers<[1], [0], [0], [1], [0, 0, 1, 1], [], []>} : vector<1x128xbf16>, vector<128x32xbf16>, vector<1x32xf32> -> vector<1x32xf32>
    %34 = arith.index_cast %c0_i32 : i32 to index
    %c0_26 = arith.constant 0 : index
    %35 = vector.load %arg20[%34, %c0_26] : memref<4x32xf32, #tpu.memory_space<vmem>>, vector<1x32xf32>
    %36 = arith.truncf %33 : vector<1x32xf32> to vector<1x32xbf16>
    %c0_27 = arith.constant 0 : index
    %c0_28 = arith.constant 0 : index
    %37 = vector.load %arg7[%c0_27, %c0_28] : memref<32x32xbf16, #tpu.memory_space<vmem>>, vector<32x32xbf16>
    %cst_29 = arith.constant dense<0.000000e+00> : vector<1x32xf32>
    %38 = tpu.matmul %36, %37, %cst_29 {dimension_numbers = #tpu.dot_dimension_numbers<[1], [0], [0], [1], [0, 0, 1, 1], [], []>} : vector<1x32xbf16>, vector<32x32xbf16>, vector<1x32xf32> -> vector<1x32xf32>
    %39 = arith.addf %35, %38 : vector<1x32xf32>
    %cst_30 = arith.constant 0.000000e+00 : f32
    %40 = vector.broadcast %cst_30 : f32 to vector<1x32xf32>
    %41 = arith.maximumf %39, %40 : vector<1x32xf32>
    %42 = arith.truncf %41 : vector<1x32xf32> to vector<1x32xbf16>
    %43 = arith.truncf %13 : vector<1x32xf32> to vector<1x32xbf16>
    %c0_31 = arith.constant 0 : index
    %c0_32 = arith.constant 0 : index
    %c0_33 = arith.constant 0 : index
    %44 = vector.load %arg9[%c0_31, %c0_32, %c0_33] : memref<3x32x32xbf16, #tpu.memory_space<vmem>>, vector<1x32x32xbf16>
    %45 = vector.shape_cast %44 : vector<1x32x32xbf16> to vector<32x32xbf16>
    %cst_34 = arith.constant dense<0.000000e+00> : vector<1x32xf32>
    %46 = tpu.matmul %42, %45, %cst_34 {dimension_numbers = #tpu.dot_dimension_numbers<[1], [0], [0], [1], [0, 0, 1, 1], [], []>} : vector<1x32xbf16>, vector<32x32xbf16>, vector<1x32xf32> -> vector<1x32xf32>
    %c0_35 = arith.constant 0 : index
    %c0_36 = arith.constant 0 : index
    %c0_37 = arith.constant 0 : index
    %47 = vector.load %arg11[%c0_35, %c0_36, %c0_37] : memref<3x1x32xf32, #tpu.memory_space<vmem>>, vector<1x1x32xf32>
    %48 = vector.shape_cast %47 : vector<1x1x32xf32> to vector<1x32xf32>
    %49 = arith.addf %46, %48 : vector<1x32xf32>
    %c0_38 = arith.constant 0 : index
    %c0_39 = arith.constant 0 : index
    %c0_40 = arith.constant 0 : index
    %50 = vector.load %arg10[%c0_38, %c0_39, %c0_40] : memref<3x32x32xbf16, #tpu.memory_space<vmem>>, vector<1x32x32xbf16>
    %51 = vector.shape_cast %50 : vector<1x32x32xbf16> to vector<32x32xbf16>
    %cst_41 = arith.constant dense<0.000000e+00> : vector<1x32xf32>
    %52 = tpu.matmul %43, %51, %cst_41 {dimension_numbers = #tpu.dot_dimension_numbers<[1], [0], [0], [1], [0, 0, 1, 1], [], []>} : vector<1x32xbf16>, vector<32x32xbf16>, vector<1x32xf32> -> vector<1x32xf32>
    %53 = arith.addf %49, %52 : vector<1x32xf32>
    %c0_42 = arith.constant 0 : index
    %c0_43 = arith.constant 0 : index
    %c0_44 = arith.constant 0 : index
    %54 = vector.load %arg12[%c0_42, %c0_43, %c0_44] : memref<3x1x32xf32, #tpu.memory_space<vmem>>, vector<1x1x32xf32>
    %55 = vector.shape_cast %54 : vector<1x1x32xf32> to vector<1x32xf32>
    %56 = arith.addf %53, %55 : vector<1x32xf32>
    %57 = arith.negf %56 : vector<1x32xf32>
    %58 = math.exp %57 : vector<1x32xf32>
    %cst_45 = arith.constant 1.000000e+00 : f32
    %59 = vector.broadcast %cst_45 : f32 to vector<1x32xf32>
    %60 = arith.addf %59, %58 : vector<1x32xf32>
    %61 = arith.divf %59, %60 : vector<1x32xf32>
    %c1 = arith.constant 1 : index
    %c0_46 = arith.constant 0 : index
    %c0_47 = arith.constant 0 : index
    %62 = vector.load %arg9[%c1, %c0_46, %c0_47] : memref<3x32x32xbf16, #tpu.memory_space<vmem>>, vector<1x32x32xbf16>
    %63 = vector.shape_cast %62 : vector<1x32x32xbf16> to vector<32x32xbf16>
    %cst_48 = arith.constant dense<0.000000e+00> : vector<1x32xf32>
    %64 = tpu.matmul %42, %63, %cst_48 {dimension_numbers = #tpu.dot_dimension_numbers<[1], [0], [0], [1], [0, 0, 1, 1], [], []>} : vector<1x32xbf16>, vector<32x32xbf16>, vector<1x32xf32> -> vector<1x32xf32>
    %c1_49 = arith.constant 1 : index
    %c0_50 = arith.constant 0 : index
    %c0_51 = arith.constant 0 : index
    %65 = vector.load %arg11[%c1_49, %c0_50, %c0_51] : memref<3x1x32xf32, #tpu.memory_space<vmem>>, vector<1x1x32xf32>
    %66 = vector.shape_cast %65 : vector<1x1x32xf32> to vector<1x32xf32>
    %67 = arith.addf %64, %66 : vector<1x32xf32>
    %c1_52 = arith.constant 1 : index
    %c0_53 = arith.constant 0 : index
    %c0_54 = arith.constant 0 : index
    %68 = vector.load %arg10[%c1_52, %c0_53, %c0_54] : memref<3x32x32xbf16, #tpu.memory_space<vmem>>, vector<1x32x32xbf16>
    %69 = vector.shape_cast %68 : vector<1x32x32xbf16> to vector<32x32xbf16>
    %cst_55 = arith.constant dense<0.000000e+00> : vector<1x32xf32>
    %70 = tpu.matmul %43, %69, %cst_55 {dimension_numbers = #tpu.dot_dimension_numbers<[1], [0], [0], [1], [0, 0, 1, 1], [], []>} : vector<1x32xbf16>, vector<32x32xbf16>, vector<1x32xf32> -> vector<1x32xf32>
    %71 = arith.addf %67, %70 : vector<1x32xf32>
    %c1_56 = arith.constant 1 : index
    %c0_57 = arith.constant 0 : index
    %c0_58 = arith.constant 0 : index
    %72 = vector.load %arg12[%c1_56, %c0_57, %c0_58] : memref<3x1x32xf32, #tpu.memory_space<vmem>>, vector<1x1x32xf32>
    %73 = vector.shape_cast %72 : vector<1x1x32xf32> to vector<1x32xf32>
    %74 = arith.addf %71, %73 : vector<1x32xf32>
    %75 = arith.negf %74 : vector<1x32xf32>
    %76 = math.exp %75 : vector<1x32xf32>
    %cst_59 = arith.constant 1.000000e+00 : f32
    %77 = vector.broadcast %cst_59 : f32 to vector<1x32xf32>
    %78 = arith.addf %77, %76 : vector<1x32xf32>
    %79 = arith.divf %77, %78 : vector<1x32xf32>
    %c2 = arith.constant 2 : index
    %c0_60 = arith.constant 0 : index
    %c0_61 = arith.constant 0 : index
    %80 = vector.load %arg10[%c2, %c0_60, %c0_61] : memref<3x32x32xbf16, #tpu.memory_space<vmem>>, vector<1x32x32xbf16>
    %81 = vector.shape_cast %80 : vector<1x32x32xbf16> to vector<32x32xbf16>
    %cst_62 = arith.constant dense<0.000000e+00> : vector<1x32xf32>
    %82 = tpu.matmul %43, %81, %cst_62 {dimension_numbers = #tpu.dot_dimension_numbers<[1], [0], [0], [1], [0, 0, 1, 1], [], []>} : vector<1x32xbf16>, vector<32x32xbf16>, vector<1x32xf32> -> vector<1x32xf32>
    %c2_63 = arith.constant 2 : index
    %c0_64 = arith.constant 0 : index
    %c0_65 = arith.constant 0 : index
    %83 = vector.load %arg12[%c2_63, %c0_64, %c0_65] : memref<3x1x32xf32, #tpu.memory_space<vmem>>, vector<1x1x32xf32>
    %84 = vector.shape_cast %83 : vector<1x1x32xf32> to vector<1x32xf32>
    %85 = arith.addf %82, %84 : vector<1x32xf32>
    %c2_66 = arith.constant 2 : index
    %c0_67 = arith.constant 0 : index
    %c0_68 = arith.constant 0 : index
    %86 = vector.load %arg9[%c2_66, %c0_67, %c0_68] : memref<3x32x32xbf16, #tpu.memory_space<vmem>>, vector<1x32x32xbf16>
    %87 = vector.shape_cast %86 : vector<1x32x32xbf16> to vector<32x32xbf16>
    %cst_69 = arith.constant dense<0.000000e+00> : vector<1x32xf32>
    %88 = tpu.matmul %42, %87, %cst_69 {dimension_numbers = #tpu.dot_dimension_numbers<[1], [0], [0], [1], [0, 0, 1, 1], [], []>} : vector<1x32xbf16>, vector<32x32xbf16>, vector<1x32xf32> -> vector<1x32xf32>
    %c2_70 = arith.constant 2 : index
    %c0_71 = arith.constant 0 : index
    %c0_72 = arith.constant 0 : index
    %89 = vector.load %arg11[%c2_70, %c0_71, %c0_72] : memref<3x1x32xf32, #tpu.memory_space<vmem>>, vector<1x1x32xf32>
    %90 = vector.shape_cast %89 : vector<1x1x32xf32> to vector<1x32xf32>
    %91 = arith.addf %88, %90 : vector<1x32xf32>
    %92 = arith.mulf %61, %85 : vector<1x32xf32>
    %93 = arith.addf %91, %92 : vector<1x32xf32>
    %94 = math.tanh %93 : vector<1x32xf32>
    %cst_73 = arith.constant 1.000000e+00 : f32
    %95 = vector.broadcast %cst_73 : f32 to vector<1x32xf32>
    %96 = arith.subf %95, %79 : vector<1x32xf32>
    %97 = arith.mulf %96, %94 : vector<1x32xf32>
    %98 = arith.mulf %79, %13 : vector<1x32xf32>
    %99 = arith.addf %97, %98 : vector<1x32xf32>
    %100 = arith.index_cast %c0_i32 : i32 to index
    %c0_74 = arith.constant 0 : index
    %101 = vector.load %arg18[%100, %c0_74] : memref<4x32xf32, #tpu.memory_space<vmem>>, vector<1x32xf32>
    tpu.vector_store %arg18[%100, %c0_74], %99 {strides = array<i32>} : memref<4x32xf32, #tpu.memory_space<vmem>>, vector<1x32xf32>,
    %c1_i32 = arith.constant 1 : i32
    %102 = arith.truncf %99 : vector<1x32xf32> to vector<1x32xbf16>
    %103 = arith.index_cast %c1_i32 : i32 to index
    %c0_75 = arith.constant 0 : index
    %104 = vector.load %arg19[%103, %c0_75] : memref<4x128xf32, #tpu.memory_space<vmem>>, vector<1x128xf32>
    %c0_76 = arith.constant 0 : index
    %c0_77 = arith.constant 0 : index
    %105 = vector.load %arg4[%c0_76, %c0_77] : memref<32x128xbf16, #tpu.memory_space<vmem>>, vector<32x128xbf16>
    %cst_78 = arith.constant dense<0.000000e+00> : vector<1x128xf32>
    %106 = tpu.matmul %102, %105, %cst_78 {dimension_numbers = #tpu.dot_dimension_numbers<[1], [0], [0], [1], [0, 0, 1, 1], [], []>} : vector<1x32xbf16>, vector<32x128xbf16>, vector<1x128xf32> -> vector<1x128xf32>
    %107 = arith.addf %104, %106 : vector<1x128xf32>
    %cst_79 = arith.constant dense<0xFF800000> : vector<1xf32>
    %108 = vector.multi_reduction <maximumf>, %107, %cst_79 [1] : vector<1x128xf32> to vector<1xf32>
    %109 = vector.shape_cast %108 : vector<1xf32> to vector<1x1xf32>
    %110 = vector.broadcast %109 : vector<1x1xf32> to vector<1x128xf32>
    %111 = arith.subf %107, %110 : vector<1x128xf32>
    %112 = math.exp %111 : vector<1x128xf32>
    %cst_80 = arith.constant dense<0.000000e+00> : vector<1xf32>
    %113 = vector.multi_reduction <add>, %112, %cst_80 [1] : vector<1x128xf32> to vector<1xf32>
    %114 = vector.shape_cast %113 : vector<1xf32> to vector<1x1xf32>
    %115 = vector.broadcast %114 : vector<1x1xf32> to vector<1x128xf32>
    %116 = arith.divf %112, %115 : vector<1x128xf32>
    %117 = arith.index_cast %c1_i32 : i32 to index
    %c0_81 = arith.constant 0 : index
    %118 = vector.load %arg17[%117, %c0_81] : memref<4x128xf32, #tpu.memory_space<vmem>>, vector<1x128xf32>
    tpu.vector_store %arg17[%117, %c0_81], %116 {strides = array<i32>} : memref<4x128xf32, #tpu.memory_space<vmem>>, vector<1x128xf32>,
    %119 = arith.truncf %116 : vector<1x128xf32> to vector<1x128xbf16>
    %c0_82 = arith.constant 0 : index
    %c0_83 = arith.constant 0 : index
    %120 = vector.load %arg2[%c0_82, %c0_83] : memref<128x32xbf16, #tpu.memory_space<vmem>>, vector<128x32xbf16>
    %cst_84 = arith.constant dense<0.000000e+00> : vector<1x32xf32>
    %121 = tpu.matmul %119, %120, %cst_84 {dimension_numbers = #tpu.dot_dimension_numbers<[1], [0], [0], [1], [0, 0, 1, 1], [], []>} : vector<1x128xbf16>, vector<128x32xbf16>, vector<1x32xf32> -> vector<1x32xf32>
    %122 = arith.index_cast %c1_i32 : i32 to index
    %c0_85 = arith.constant 0 : index
    %123 = vector.load %arg20[%122, %c0_85] : memref<4x32xf32, #tpu.memory_space<vmem>>, vector<1x32xf32>
    %124 = arith.truncf %121 : vector<1x32xf32> to vector<1x32xbf16>
    %c0_86 = arith.constant 0 : index
    %c0_87 = arith.constant 0 : index
    %125 = vector.load %arg7[%c0_86, %c0_87] : memref<32x32xbf16, #tpu.memory_space<vmem>>, vector<32x32xbf16>
    %cst_88 = arith.constant dense<0.000000e+00> : vector<1x32xf32>
    %126 = tpu.matmul %124, %125, %cst_88 {dimension_numbers = #tpu.dot_dimension_numbers<[1], [0], [0], [1], [0, 0, 1, 1], [], []>} : vector<1x32xbf16>, vector<32x32xbf16>, vector<1x32xf32> -> vector<1x32xf32>
    %127 = arith.addf %123, %126 : vector<1x32xf32>
    %cst_89 = arith.constant 0.000000e+00 : f32
    %128 = vector.broadcast %cst_89 : f32 to vector<1x32xf32>
    %129 = arith.maximumf %127, %128 : vector<1x32xf32>
    %130 = arith.truncf %129 : vector<1x32xf32> to vector<1x32xbf16>
    %131 = arith.truncf %99 : vector<1x32xf32> to vector<1x32xbf16>
    %c0_90 = arith.constant 0 : index
    %c0_91 = arith.constant 0 : index
    %c0_92 = arith.constant 0 : index
    %132 = vector.load %arg9[%c0_90, %c0_91, %c0_92] : memref<3x32x32xbf16, #tpu.memory_space<vmem>>, vector<1x32x32xbf16>
    %133 = vector.shape_cast %132 : vector<1x32x32xbf16> to vector<32x32xbf16>
    %cst_93 = arith.constant dense<0.000000e+00> : vector<1x32xf32>
    %134 = tpu.matmul %130, %133, %cst_93 {dimension_numbers = #tpu.dot_dimension_numbers<[1], [0], [0], [1], [0, 0, 1, 1], [], []>} : vector<1x32xbf16>, vector<32x32xbf16>, vector<1x32xf32> -> vector<1x32xf32>
    %c0_94 = arith.constant 0 : index
    %c0_95 = arith.constant 0 : index
    %c0_96 = arith.constant 0 : index
    %135 = vector.load %arg11[%c0_94, %c0_95, %c0_96] : memref<3x1x32xf32, #tpu.memory_space<vmem>>, vector<1x1x32xf32>
    %136 = vector.shape_cast %135 : vector<1x1x32xf32> to vector<1x32xf32>
    %137 = arith.addf %134, %136 : vector<1x32xf32>
    %c0_97 = arith.constant 0 : index
    %c0_98 = arith.constant 0 : index
    %c0_99 = arith.constant 0 : index
    %138 = vector.load %arg10[%c0_97, %c0_98, %c0_99] : memref<3x32x32xbf16, #tpu.memory_space<vmem>>, vector<1x32x32xbf16>
    %139 = vector.shape_cast %138 : vector<1x32x32xbf16> to vector<32x32xbf16>
    %cst_100 = arith.constant dense<0.000000e+00> : vector<1x32xf32>
    %140 = tpu.matmul %131, %139, %cst_100 {dimension_numbers = #tpu.dot_dimension_numbers<[1], [0], [0], [1], [0, 0, 1, 1], [], []>} : vector<1x32xbf16>, vector<32x32xbf16>, vector<1x32xf32> -> vector<1x32xf32>
    %141 = arith.addf %137, %140 : vector<1x32xf32>
    %c0_101 = arith.constant 0 : index
    %c0_102 = arith.constant 0 : index
    %c0_103 = arith.constant 0 : index
    %142 = vector.load %arg12[%c0_101, %c0_102, %c0_103] : memref<3x1x32xf32, #tpu.memory_space<vmem>>, vector<1x1x32xf32>
    %143 = vector.shape_cast %142 : vector<1x1x32xf32> to vector<1x32xf32>
    %144 = arith.addf %141, %143 : vector<1x32xf32>
    %145 = arith.negf %144 : vector<1x32xf32>
    %146 = math.exp %145 : vector<1x32xf32>
    %cst_104 = arith.constant 1.000000e+00 : f32
    %147 = vector.broadcast %cst_104 : f32 to vector<1x32xf32>
    %148 = arith.addf %147, %146 : vector<1x32xf32>
    %149 = arith.divf %147, %148 : vector<1x32xf32>
    %c1_105 = arith.constant 1 : index
    %c0_106 = arith.constant 0 : index
    %c0_107 = arith.constant 0 : index
    %150 = vector.load %arg9[%c1_105, %c0_106, %c0_107] : memref<3x32x32xbf16, #tpu.memory_space<vmem>>, vector<1x32x32xbf16>
    %151 = vector.shape_cast %150 : vector<1x32x32xbf16> to vector<32x32xbf16>
    %cst_108 = arith.constant dense<0.000000e+00> : vector<1x32xf32>
    %152 = tpu.matmul %130, %151, %cst_108 {dimension_numbers = #tpu.dot_dimension_numbers<[1], [0], [0], [1], [0, 0, 1, 1], [], []>} : vector<1x32xbf16>, vector<32x32xbf16>, vector<1x32xf32> -> vector<1x32xf32>
    %c1_109 = arith.constant 1 : index
    %c0_110 = arith.constant 0 : index
    %c0_111 = arith.constant 0 : index
    %153 = vector.load %arg11[%c1_109, %c0_110, %c0_111] : memref<3x1x32xf32, #tpu.memory_space<vmem>>, vector<1x1x32xf32>
    %154 = vector.shape_cast %153 : vector<1x1x32xf32> to vector<1x32xf32>
    %155 = arith.addf %152, %154 : vector<1x32xf32>
    %c1_112 = arith.constant 1 : index
    %c0_113 = arith.constant 0 : index
    %c0_114 = arith.constant 0 : index
    %156 = vector.load %arg10[%c1_112, %c0_113, %c0_114] : memref<3x32x32xbf16, #tpu.memory_space<vmem>>, vector<1x32x32xbf16>
    %157 = vector.shape_cast %156 : vector<1x32x32xbf16> to vector<32x32xbf16>
    %cst_115 = arith.constant dense<0.000000e+00> : vector<1x32xf32>
    %158 = tpu.matmul %131, %157, %cst_115 {dimension_numbers = #tpu.dot_dimension_numbers<[1], [0], [0], [1], [0, 0, 1, 1], [], []>} : vector<1x32xbf16>, vector<32x32xbf16>, vector<1x32xf32> -> vector<1x32xf32>
    %159 = arith.addf %155, %158 : vector<1x32xf32>
    %c1_116 = arith.constant 1 : index
    %c0_117 = arith.constant 0 : index
    %c0_118 = arith.constant 0 : index
    %160 = vector.load %arg12[%c1_116, %c0_117, %c0_118] : memref<3x1x32xf32, #tpu.memory_space<vmem>>, vector<1x1x32xf32>
    %161 = vector.shape_cast %160 : vector<1x1x32xf32> to vector<1x32xf32>
    %162 = arith.addf %159, %161 : vector<1x32xf32>
    %163 = arith.negf %162 : vector<1x32xf32>
    %164 = math.exp %163 : vector<1x32xf32>
    %cst_119 = arith.constant 1.000000e+00 : f32
    %165 = vector.broadcast %cst_119 : f32 to vector<1x32xf32>
    %166 = arith.addf %165, %164 : vector<1x32xf32>
    %167 = arith.divf %165, %166 : vector<1x32xf32>
    %c2_120 = arith.constant 2 : index
    %c0_121 = arith.constant 0 : index
    %c0_122 = arith.constant 0 : index
    %168 = vector.load %arg10[%c2_120, %c0_121, %c0_122] : memref<3x32x32xbf16, #tpu.memory_space<vmem>>, vector<1x32x32xbf16>
    %169 = vector.shape_cast %168 : vector<1x32x32xbf16> to vector<32x32xbf16>
    %cst_123 = arith.constant dense<0.000000e+00> : vector<1x32xf32>
    %170 = tpu.matmul %131, %169, %cst_123 {dimension_numbers = #tpu.dot_dimension_numbers<[1], [0], [0], [1], [0, 0, 1, 1], [], []>} : vector<1x32xbf16>, vector<32x32xbf16>, vector<1x32xf32> -> vector<1x32xf32>
    %c2_124 = arith.constant 2 : index
    %c0_125 = arith.constant 0 : index
    %c0_126 = arith.constant 0 : index
    %171 = vector.load %arg12[%c2_124, %c0_125, %c0_126] : memref<3x1x32xf32, #tpu.memory_space<vmem>>, vector<1x1x32xf32>
    %172 = vector.shape_cast %171 : vector<1x1x32xf32> to vector<1x32xf32>
    %173 = arith.addf %170, %172 : vector<1x32xf32>
    %c2_127 = arith.constant 2 : index
    %c0_128 = arith.constant 0 : index
    %c0_129 = arith.constant 0 : index
    %174 = vector.load %arg9[%c2_127, %c0_128, %c0_129] : memref<3x32x32xbf16, #tpu.memory_space<vmem>>, vector<1x32x32xbf16>
    %175 = vector.shape_cast %174 : vector<1x32x32xbf16> to vector<32x32xbf16>
    %cst_130 = arith.constant dense<0.000000e+00> : vector<1x32xf32>
    %176 = tpu.matmul %130, %175, %cst_130 {dimension_numbers = #tpu.dot_dimension_numbers<[1], [0], [0], [1], [0, 0, 1, 1], [], []>} : vector<1x32xbf16>, vector<32x32xbf16>, vector<1x32xf32> -> vector<1x32xf32>
    %c2_131 = arith.constant 2 : index
    %c0_132 = arith.constant 0 : index
    %c0_133 = arith.constant 0 : index
    %177 = vector.load %arg11[%c2_131, %c0_132, %c0_133] : memref<3x1x32xf32, #tpu.memory_space<vmem>>, vector<1x1x32xf32>
    %178 = vector.shape_cast %177 : vector<1x1x32xf32> to vector<1x32xf32>
    %179 = arith.addf %176, %178 : vector<1x32xf32>
    %180 = arith.mulf %149, %173 : vector<1x32xf32>
    %181 = arith.addf %179, %180 : vector<1x32xf32>
    %182 = math.tanh %181 : vector<1x32xf32>
    %cst_134 = arith.constant 1.000000e+00 : f32
    %183 = vector.broadcast %cst_134 : f32 to vector<1x32xf32>
    %184 = arith.subf %183, %167 : vector<1x32xf32>
    %185 = arith.mulf %184, %182 : vector<1x32xf32>
    %186 = arith.mulf %167, %99 : vector<1x32xf32>
    %187 = arith.addf %185, %186 : vector<1x32xf32>
    %188 = arith.index_cast %c1_i32 : i32 to index
    %c0_135 = arith.constant 0 : index
    %189 = vector.load %arg18[%188, %c0_135] : memref<4x32xf32, #tpu.memory_space<vmem>>, vector<1x32xf32>
    tpu.vector_store %arg18[%188, %c0_135], %187 {strides = array<i32>} : memref<4x32xf32, #tpu.memory_space<vmem>>, vector<1x32xf32>,
    %c2_i32 = arith.constant 2 : i32
    %190 = arith.truncf %187 : vector<1x32xf32> to vector<1x32xbf16>
    %191 = arith.index_cast %c2_i32 : i32 to index
    %c0_136 = arith.constant 0 : index
    %192 = vector.load %arg19[%191, %c0_136] : memref<4x128xf32, #tpu.memory_space<vmem>>, vector<1x128xf32>
    %c0_137 = arith.constant 0 : index
    %c0_138 = arith.constant 0 : index
    %193 = vector.load %arg4[%c0_137, %c0_138] : memref<32x128xbf16, #tpu.memory_space<vmem>>, vector<32x128xbf16>
    %cst_139 = arith.constant dense<0.000000e+00> : vector<1x128xf32>
    %194 = tpu.matmul %190, %193, %cst_139 {dimension_numbers = #tpu.dot_dimension_numbers<[1], [0], [0], [1], [0, 0, 1, 1], [], []>} : vector<1x32xbf16>, vector<32x128xbf16>, vector<1x128xf32> -> vector<1x128xf32>
    %195 = arith.addf %192, %194 : vector<1x128xf32>
    %cst_140 = arith.constant dense<0xFF800000> : vector<1xf32>
    %196 = vector.multi_reduction <maximumf>, %195, %cst_140 [1] : vector<1x128xf32> to vector<1xf32>
    %197 = vector.shape_cast %196 : vector<1xf32> to vector<1x1xf32>
    %198 = vector.broadcast %197 : vector<1x1xf32> to vector<1x128xf32>
    %199 = arith.subf %195, %198 : vector<1x128xf32>
    %200 = math.exp %199 : vector<1x128xf32>
    %cst_141 = arith.constant dense<0.000000e+00> : vector<1xf32>
    %201 = vector.multi_reduction <add>, %200, %cst_141 [1] : vector<1x128xf32> to vector<1xf32>
    %202 = vector.shape_cast %201 : vector<1xf32> to vector<1x1xf32>
    %203 = vector.broadcast %202 : vector<1x1xf32> to vector<1x128xf32>
    %204 = arith.divf %200, %203 : vector<1x128xf32>
    %205 = arith.index_cast %c2_i32 : i32 to index
    %c0_142 = arith.constant 0 : index
    %206 = vector.load %arg17[%205, %c0_142] : memref<4x128xf32, #tpu.memory_space<vmem>>, vector<1x128xf32>
    tpu.vector_store %arg17[%205, %c0_142], %204 {strides = array<i32>} : memref<4x128xf32, #tpu.memory_space<vmem>>, vector<1x128xf32>,
    %207 = arith.truncf %204 : vector<1x128xf32> to vector<1x128xbf16>
    %c0_143 = arith.constant 0 : index
    %c0_144 = arith.constant 0 : index
    %208 = vector.load %arg2[%c0_143, %c0_144] : memref<128x32xbf16, #tpu.memory_space<vmem>>, vector<128x32xbf16>
    %cst_145 = arith.constant dense<0.000000e+00> : vector<1x32xf32>
    %209 = tpu.matmul %207, %208, %cst_145 {dimension_numbers = #tpu.dot_dimension_numbers<[1], [0], [0], [1], [0, 0, 1, 1], [], []>} : vector<1x128xbf16>, vector<128x32xbf16>, vector<1x32xf32> -> vector<1x32xf32>
    %210 = arith.index_cast %c2_i32 : i32 to index
    %c0_146 = arith.constant 0 : index
    %211 = vector.load %arg20[%210, %c0_146] : memref<4x32xf32, #tpu.memory_space<vmem>>, vector<1x32xf32>
    %212 = arith.truncf %209 : vector<1x32xf32> to vector<1x32xbf16>
    %c0_147 = arith.constant 0 : index
    %c0_148 = arith.constant 0 : index
    %213 = vector.load %arg7[%c0_147, %c0_148] : memref<32x32xbf16, #tpu.memory_space<vmem>>, vector<32x32xbf16>
    %cst_149 = arith.constant dense<0.000000e+00> : vector<1x32xf32>
    %214 = tpu.matmul %212, %213, %cst_149 {dimension_numbers = #tpu.dot_dimension_numbers<[1], [0], [0], [1], [0, 0, 1, 1], [], []>} : vector<1x32xbf16>, vector<32x32xbf16>, vector<1x32xf32> -> vector<1x32xf32>
    %215 = arith.addf %211, %214 : vector<1x32xf32>
    %cst_150 = arith.constant 0.000000e+00 : f32
    %216 = vector.broadcast %cst_150 : f32 to vector<1x32xf32>
    %217 = arith.maximumf %215, %216 : vector<1x32xf32>
    %218 = arith.truncf %217 : vector<1x32xf32> to vector<1x32xbf16>
    %219 = arith.truncf %187 : vector<1x32xf32> to vector<1x32xbf16>
    %c0_151 = arith.constant 0 : index
    %c0_152 = arith.constant 0 : index
    %c0_153 = arith.constant 0 : index
    %220 = vector.load %arg9[%c0_151, %c0_152, %c0_153] : memref<3x32x32xbf16, #tpu.memory_space<vmem>>, vector<1x32x32xbf16>
    %221 = vector.shape_cast %220 : vector<1x32x32xbf16> to vector<32x32xbf16>
    %cst_154 = arith.constant dense<0.000000e+00> : vector<1x32xf32>
    %222 = tpu.matmul %218, %221, %cst_154 {dimension_numbers = #tpu.dot_dimension_numbers<[1], [0], [0], [1], [0, 0, 1, 1], [], []>} : vector<1x32xbf16>, vector<32x32xbf16>, vector<1x32xf32> -> vector<1x32xf32>
    %c0_155 = arith.constant 0 : index
    %c0_156 = arith.constant 0 : index
    %c0_157 = arith.constant 0 : index
    %223 = vector.load %arg11[%c0_155, %c0_156, %c0_157] : memref<3x1x32xf32, #tpu.memory_space<vmem>>, vector<1x1x32xf32>
    %224 = vector.shape_cast %223 : vector<1x1x32xf32> to vector<1x32xf32>
    %225 = arith.addf %222, %224 : vector<1x32xf32>
    %c0_158 = arith.constant 0 : index
    %c0_159 = arith.constant 0 : index
    %c0_160 = arith.constant 0 : index
    %226 = vector.load %arg10[%c0_158, %c0_159, %c0_160] : memref<3x32x32xbf16, #tpu.memory_space<vmem>>, vector<1x32x32xbf16>
    %227 = vector.shape_cast %226 : vector<1x32x32xbf16> to vector<32x32xbf16>
    %cst_161 = arith.constant dense<0.000000e+00> : vector<1x32xf32>
    %228 = tpu.matmul %219, %227, %cst_161 {dimension_numbers = #tpu.dot_dimension_numbers<[1], [0], [0], [1], [0, 0, 1, 1], [], []>} : vector<1x32xbf16>, vector<32x32xbf16>, vector<1x32xf32> -> vector<1x32xf32>
    %229 = arith.addf %225, %228 : vector<1x32xf32>
    %c0_162 = arith.constant 0 : index
    %c0_163 = arith.constant 0 : index
    %c0_164 = arith.constant 0 : index
    %230 = vector.load %arg12[%c0_162, %c0_163, %c0_164] : memref<3x1x32xf32, #tpu.memory_space<vmem>>, vector<1x1x32xf32>
    %231 = vector.shape_cast %230 : vector<1x1x32xf32> to vector<1x32xf32>
    %232 = arith.addf %229, %231 : vector<1x32xf32>
    %233 = arith.negf %232 : vector<1x32xf32>
    %234 = math.exp %233 : vector<1x32xf32>
    %cst_165 = arith.constant 1.000000e+00 : f32
    %235 = vector.broadcast %cst_165 : f32 to vector<1x32xf32>
    %236 = arith.addf %235, %234 : vector<1x32xf32>
    %237 = arith.divf %235, %236 : vector<1x32xf32>
    %c1_166 = arith.constant 1 : index
    %c0_167 = arith.constant 0 : index
    %c0_168 = arith.constant 0 : index
    %238 = vector.load %arg9[%c1_166, %c0_167, %c0_168] : memref<3x32x32xbf16, #tpu.memory_space<vmem>>, vector<1x32x32xbf16>
    %239 = vector.shape_cast %238 : vector<1x32x32xbf16> to vector<32x32xbf16>
    %cst_169 = arith.constant dense<0.000000e+00> : vector<1x32xf32>
    %240 = tpu.matmul %218, %239, %cst_169 {dimension_numbers = #tpu.dot_dimension_numbers<[1], [0], [0], [1], [0, 0, 1, 1], [], []>} : vector<1x32xbf16>, vector<32x32xbf16>, vector<1x32xf32> -> vector<1x32xf32>
    %c1_170 = arith.constant 1 : index
    %c0_171 = arith.constant 0 : index
    %c0_172 = arith.constant 0 : index
    %241 = vector.load %arg11[%c1_170, %c0_171, %c0_172] : memref<3x1x32xf32, #tpu.memory_space<vmem>>, vector<1x1x32xf32>
    %242 = vector.shape_cast %241 : vector<1x1x32xf32> to vector<1x32xf32>
    %243 = arith.addf %240, %242 : vector<1x32xf32>
    %c1_173 = arith.constant 1 : index
    %c0_174 = arith.constant 0 : index
    %c0_175 = arith.constant 0 : index
    %244 = vector.load %arg10[%c1_173, %c0_174, %c0_175] : memref<3x32x32xbf16, #tpu.memory_space<vmem>>, vector<1x32x32xbf16>
    %245 = vector.shape_cast %244 : vector<1x32x32xbf16> to vector<32x32xbf16>
    %cst_176 = arith.constant dense<0.000000e+00> : vector<1x32xf32>
    %246 = tpu.matmul %219, %245, %cst_176 {dimension_numbers = #tpu.dot_dimension_numbers<[1], [0], [0], [1], [0, 0, 1, 1], [], []>} : vector<1x32xbf16>, vector<32x32xbf16>, vector<1x32xf32> -> vector<1x32xf32>
    %247 = arith.addf %243, %246 : vector<1x32xf32>
    %c1_177 = arith.constant 1 : index
    %c0_178 = arith.constant 0 : index
    %c0_179 = arith.constant 0 : index
    %248 = vector.load %arg12[%c1_177, %c0_178, %c0_179] : memref<3x1x32xf32, #tpu.memory_space<vmem>>, vector<1x1x32xf32>
    %249 = vector.shape_cast %248 : vector<1x1x32xf32> to vector<1x32xf32>
    %250 = arith.addf %247, %249 : vector<1x32xf32>
    %251 = arith.negf %250 : vector<1x32xf32>
    %252 = math.exp %251 : vector<1x32xf32>
    %cst_180 = arith.constant 1.000000e+00 : f32
    %253 = vector.broadcast %cst_180 : f32 to vector<1x32xf32>
    %254 = arith.addf %253, %252 : vector<1x32xf32>
    %255 = arith.divf %253, %254 : vector<1x32xf32>
    %c2_181 = arith.constant 2 : index
    %c0_182 = arith.constant 0 : index
    %c0_183 = arith.constant 0 : index
    %256 = vector.load %arg10[%c2_181, %c0_182, %c0_183] : memref<3x32x32xbf16, #tpu.memory_space<vmem>>, vector<1x32x32xbf16>
    %257 = vector.shape_cast %256 : vector<1x32x32xbf16> to vector<32x32xbf16>
    %cst_184 = arith.constant dense<0.000000e+00> : vector<1x32xf32>
    %258 = tpu.matmul %219, %257, %cst_184 {dimension_numbers = #tpu.dot_dimension_numbers<[1], [0], [0], [1], [0, 0, 1, 1], [], []>} : vector<1x32xbf16>, vector<32x32xbf16>, vector<1x32xf32> -> vector<1x32xf32>
    %c2_185 = arith.constant 2 : index
    %c0_186 = arith.constant 0 : index
    %c0_187 = arith.constant 0 : index
    %259 = vector.load %arg12[%c2_185, %c0_186, %c0_187] : memref<3x1x32xf32, #tpu.memory_space<vmem>>, vector<1x1x32xf32>
    %260 = vector.shape_cast %259 : vector<1x1x32xf32> to vector<1x32xf32>
    %261 = arith.addf %258, %260 : vector<1x32xf32>
    %c2_188 = arith.constant 2 : index
    %c0_189 = arith.constant 0 : index
    %c0_190 = arith.constant 0 : index
    %262 = vector.load %arg9[%c2_188, %c0_189, %c0_190] : memref<3x32x32xbf16, #tpu.memory_space<vmem>>, vector<1x32x32xbf16>
    %263 = vector.shape_cast %262 : vector<1x32x32xbf16> to vector<32x32xbf16>
    %cst_191 = arith.constant dense<0.000000e+00> : vector<1x32xf32>
    %264 = tpu.matmul %218, %263, %cst_191 {dimension_numbers = #tpu.dot_dimension_numbers<[1], [0], [0], [1], [0, 0, 1, 1], [], []>} : vector<1x32xbf16>, vector<32x32xbf16>, vector<1x32xf32> -> vector<1x32xf32>
    %c2_192 = arith.constant 2 : index
    %c0_193 = arith.constant 0 : index
    %c0_194 = arith.constant 0 : index
    %265 = vector.load %arg11[%c2_192, %c0_193, %c0_194] : memref<3x1x32xf32, #tpu.memory_space<vmem>>, vector<1x1x32xf32>
    %266 = vector.shape_cast %265 : vector<1x1x32xf32> to vector<1x32xf32>
    %267 = arith.addf %264, %266 : vector<1x32xf32>
    %268 = arith.mulf %237, %261 : vector<1x32xf32>
    %269 = arith.addf %267, %268 : vector<1x32xf32>
    %270 = math.tanh %269 : vector<1x32xf32>
    %cst_195 = arith.constant 1.000000e+00 : f32
    %271 = vector.broadcast %cst_195 : f32 to vector<1x32xf32>
    %272 = arith.subf %271, %255 : vector<1x32xf32>
    %273 = arith.mulf %272, %270 : vector<1x32xf32>
    %274 = arith.mulf %255, %187 : vector<1x32xf32>
    %275 = arith.addf %273, %274 : vector<1x32xf32>
    %276 = arith.index_cast %c2_i32 : i32 to index
    %c0_196 = arith.constant 0 : index
    %277 = vector.load %arg18[%276, %c0_196] : memref<4x32xf32, #tpu.memory_space<vmem>>, vector<1x32xf32>
    tpu.vector_store %arg18[%276, %c0_196], %275 {strides = array<i32>} : memref<4x32xf32, #tpu.memory_space<vmem>>, vector<1x32xf32>,
    %c3_i32 = arith.constant 3 : i32
    %278 = arith.truncf %275 : vector<1x32xf32> to vector<1x32xbf16>
    %279 = arith.index_cast %c3_i32 : i32 to index
    %c0_197 = arith.constant 0 : index
    %280 = vector.load %arg19[%279, %c0_197] : memref<4x128xf32, #tpu.memory_space<vmem>>, vector<1x128xf32>
    %c0_198 = arith.constant 0 : index
    %c0_199 = arith.constant 0 : index
    %281 = vector.load %arg4[%c0_198, %c0_199] : memref<32x128xbf16, #tpu.memory_space<vmem>>, vector<32x128xbf16>
    %cst_200 = arith.constant dense<0.000000e+00> : vector<1x128xf32>
    %282 = tpu.matmul %278, %281, %cst_200 {dimension_numbers = #tpu.dot_dimension_numbers<[1], [0], [0], [1], [0, 0, 1, 1], [], []>} : vector<1x32xbf16>, vector<32x128xbf16>, vector<1x128xf32> -> vector<1x128xf32>
    %283 = arith.addf %280, %282 : vector<1x128xf32>
    %cst_201 = arith.constant dense<0xFF800000> : vector<1xf32>
    %284 = vector.multi_reduction <maximumf>, %283, %cst_201 [1] : vector<1x128xf32> to vector<1xf32>
    %285 = vector.shape_cast %284 : vector<1xf32> to vector<1x1xf32>
    %286 = vector.broadcast %285 : vector<1x1xf32> to vector<1x128xf32>
    %287 = arith.subf %283, %286 : vector<1x128xf32>
    %288 = math.exp %287 : vector<1x128xf32>
    %cst_202 = arith.constant dense<0.000000e+00> : vector<1xf32>
    %289 = vector.multi_reduction <add>, %288, %cst_202 [1] : vector<1x128xf32> to vector<1xf32>
    %290 = vector.shape_cast %289 : vector<1xf32> to vector<1x1xf32>
    %291 = vector.broadcast %290 : vector<1x1xf32> to vector<1x128xf32>
    %292 = arith.divf %288, %291 : vector<1x128xf32>
    %293 = arith.index_cast %c3_i32 : i32 to index
    %c0_203 = arith.constant 0 : index
    %294 = vector.load %arg17[%293, %c0_203] : memref<4x128xf32, #tpu.memory_space<vmem>>, vector<1x128xf32>
    tpu.vector_store %arg17[%293, %c0_203], %292 {strides = array<i32>} : memref<4x128xf32, #tpu.memory_space<vmem>>, vector<1x128xf32>,
    %295 = arith.truncf %292 : vector<1x128xf32> to vector<1x128xbf16>
    %c0_204 = arith.constant 0 : index
    %c0_205 = arith.constant 0 : index
    %296 = vector.load %arg2[%c0_204, %c0_205] : memref<128x32xbf16, #tpu.memory_space<vmem>>, vector<128x32xbf16>
    %cst_206 = arith.constant dense<0.000000e+00> : vector<1x32xf32>
    %297 = tpu.matmul %295, %296, %cst_206 {dimension_numbers = #tpu.dot_dimension_numbers<[1], [0], [0], [1], [0, 0, 1, 1], [], []>} : vector<1x128xbf16>, vector<128x32xbf16>, vector<1x32xf32> -> vector<1x32xf32>
    %298 = arith.index_cast %c3_i32 : i32 to index
    %c0_207 = arith.constant 0 : index
    %299 = vector.load %arg20[%298, %c0_207] : memref<4x32xf32, #tpu.memory_space<vmem>>, vector<1x32xf32>
    %300 = arith.truncf %297 : vector<1x32xf32> to vector<1x32xbf16>
    %c0_208 = arith.constant 0 : index
    %c0_209 = arith.constant 0 : index
    %301 = vector.load %arg7[%c0_208, %c0_209] : memref<32x32xbf16, #tpu.memory_space<vmem>>, vector<32x32xbf16>
    %cst_210 = arith.constant dense<0.000000e+00> : vector<1x32xf32>
    %302 = tpu.matmul %300, %301, %cst_210 {dimension_numbers = #tpu.dot_dimension_numbers<[1], [0], [0], [1], [0, 0, 1, 1], [], []>} : vector<1x32xbf16>, vector<32x32xbf16>, vector<1x32xf32> -> vector<1x32xf32>
    %303 = arith.addf %299, %302 : vector<1x32xf32>
    %cst_211 = arith.constant 0.000000e+00 : f32
    %304 = vector.broadcast %cst_211 : f32 to vector<1x32xf32>
    %305 = arith.maximumf %303, %304 : vector<1x32xf32>
    %306 = arith.truncf %305 : vector<1x32xf32> to vector<1x32xbf16>
    %307 = arith.truncf %275 : vector<1x32xf32> to vector<1x32xbf16>
    %c0_212 = arith.constant 0 : index
    %c0_213 = arith.constant 0 : index
    %c0_214 = arith.constant 0 : index
    %308 = vector.load %arg9[%c0_212, %c0_213, %c0_214] : memref<3x32x32xbf16, #tpu.memory_space<vmem>>, vector<1x32x32xbf16>
    %309 = vector.shape_cast %308 : vector<1x32x32xbf16> to vector<32x32xbf16>
    %cst_215 = arith.constant dense<0.000000e+00> : vector<1x32xf32>
    %310 = tpu.matmul %306, %309, %cst_215 {dimension_numbers = #tpu.dot_dimension_numbers<[1], [0], [0], [1], [0, 0, 1, 1], [], []>} : vector<1x32xbf16>, vector<32x32xbf16>, vector<1x32xf32> -> vector<1x32xf32>
    %c0_216 = arith.constant 0 : index
    %c0_217 = arith.constant 0 : index
    %c0_218 = arith.constant 0 : index
    %311 = vector.load %arg11[%c0_216, %c0_217, %c0_218] : memref<3x1x32xf32, #tpu.memory_space<vmem>>, vector<1x1x32xf32>
    %312 = vector.shape_cast %311 : vector<1x1x32xf32> to vector<1x32xf32>
    %313 = arith.addf %310, %312 : vector<1x32xf32>
    %c0_219 = arith.constant 0 : index
    %c0_220 = arith.constant 0 : index
    %c0_221 = arith.constant 0 : index
    %314 = vector.load %arg10[%c0_219, %c0_220, %c0_221] : memref<3x32x32xbf16, #tpu.memory_space<vmem>>, vector<1x32x32xbf16>
    %315 = vector.shape_cast %314 : vector<1x32x32xbf16> to vector<32x32xbf16>
    %cst_222 = arith.constant dense<0.000000e+00> : vector<1x32xf32>
    %316 = tpu.matmul %307, %315, %cst_222 {dimension_numbers = #tpu.dot_dimension_numbers<[1], [0], [0], [1], [0, 0, 1, 1], [], []>} : vector<1x32xbf16>, vector<32x32xbf16>, vector<1x32xf32> -> vector<1x32xf32>
    %317 = arith.addf %313, %316 : vector<1x32xf32>
    %c0_223 = arith.constant 0 : index
    %c0_224 = arith.constant 0 : index
    %c0_225 = arith.constant 0 : index
    %318 = vector.load %arg12[%c0_223, %c0_224, %c0_225] : memref<3x1x32xf32, #tpu.memory_space<vmem>>, vector<1x1x32xf32>
    %319 = vector.shape_cast %318 : vector<1x1x32xf32> to vector<1x32xf32>
    %320 = arith.addf %317, %319 : vector<1x32xf32>
    %321 = arith.negf %320 : vector<1x32xf32>
    %322 = math.exp %321 : vector<1x32xf32>
    %cst_226 = arith.constant 1.000000e+00 : f32
    %323 = vector.broadcast %cst_226 : f32 to vector<1x32xf32>
    %324 = arith.addf %323, %322 : vector<1x32xf32>
    %325 = arith.divf %323, %324 : vector<1x32xf32>
    %c1_227 = arith.constant 1 : index
    %c0_228 = arith.constant 0 : index
    %c0_229 = arith.constant 0 : index
    %326 = vector.load %arg9[%c1_227, %c0_228, %c0_229] : memref<3x32x32xbf16, #tpu.memory_space<vmem>>, vector<1x32x32xbf16>
    %327 = vector.shape_cast %326 : vector<1x32x32xbf16> to vector<32x32xbf16>
    %cst_230 = arith.constant dense<0.000000e+00> : vector<1x32xf32>
    %328 = tpu.matmul %306, %327, %cst_230 {dimension_numbers = #tpu.dot_dimension_numbers<[1], [0], [0], [1], [0, 0, 1, 1], [], []>} : vector<1x32xbf16>, vector<32x32xbf16>, vector<1x32xf32> -> vector<1x32xf32>
    %c1_231 = arith.constant 1 : index
    %c0_232 = arith.constant 0 : index
    %c0_233 = arith.constant 0 : index
    %329 = vector.load %arg11[%c1_231, %c0_232, %c0_233] : memref<3x1x32xf32, #tpu.memory_space<vmem>>, vector<1x1x32xf32>
    %330 = vector.shape_cast %329 : vector<1x1x32xf32> to vector<1x32xf32>
    %331 = arith.addf %328, %330 : vector<1x32xf32>
    %c1_234 = arith.constant 1 : index
    %c0_235 = arith.constant 0 : index
    %c0_236 = arith.constant 0 : index
    %332 = vector.load %arg10[%c1_234, %c0_235, %c0_236] : memref<3x32x32xbf16, #tpu.memory_space<vmem>>, vector<1x32x32xbf16>
    %333 = vector.shape_cast %332 : vector<1x32x32xbf16> to vector<32x32xbf16>
    %cst_237 = arith.constant dense<0.000000e+00> : vector<1x32xf32>
    %334 = tpu.matmul %307, %333, %cst_237 {dimension_numbers = #tpu.dot_dimension_numbers<[1], [0], [0], [1], [0, 0, 1, 1], [], []>} : vector<1x32xbf16>, vector<32x32xbf16>, vector<1x32xf32> -> vector<1x32xf32>
    %335 = arith.addf %331, %334 : vector<1x32xf32>
    %c1_238 = arith.constant 1 : index
    %c0_239 = arith.constant 0 : index
    %c0_240 = arith.constant 0 : index
    %336 = vector.load %arg12[%c1_238, %c0_239, %c0_240] : memref<3x1x32xf32, #tpu.memory_space<vmem>>, vector<1x1x32xf32>
    %337 = vector.shape_cast %336 : vector<1x1x32xf32> to vector<1x32xf32>
    %338 = arith.addf %335, %337 : vector<1x32xf32>
    %339 = arith.negf %338 : vector<1x32xf32>
    %340 = math.exp %339 : vector<1x32xf32>
    %cst_241 = arith.constant 1.000000e+00 : f32
    %341 = vector.broadcast %cst_241 : f32 to vector<1x32xf32>
    %342 = arith.addf %341, %340 : vector<1x32xf32>
    %343 = arith.divf %341, %342 : vector<1x32xf32>
    %c2_242 = arith.constant 2 : index
    %c0_243 = arith.constant 0 : index
    %c0_244 = arith.constant 0 : index
    %344 = vector.load %arg10[%c2_242, %c0_243, %c0_244] : memref<3x32x32xbf16, #tpu.memory_space<vmem>>, vector<1x32x32xbf16>
    %345 = vector.shape_cast %344 : vector<1x32x32xbf16> to vector<32x32xbf16>
    %cst_245 = arith.constant dense<0.000000e+00> : vector<1x32xf32>
    %346 = tpu.matmul %307, %345, %cst_245 {dimension_numbers = #tpu.dot_dimension_numbers<[1], [0], [0], [1], [0, 0, 1, 1], [], []>} : vector<1x32xbf16>, vector<32x32xbf16>, vector<1x32xf32> -> vector<1x32xf32>
    %c2_246 = arith.constant 2 : index
    %c0_247 = arith.constant 0 : index
    %c0_248 = arith.constant 0 : index
    %347 = vector.load %arg12[%c2_246, %c0_247, %c0_248] : memref<3x1x32xf32, #tpu.memory_space<vmem>>, vector<1x1x32xf32>
    %348 = vector.shape_cast %347 : vector<1x1x32xf32> to vector<1x32xf32>
    %349 = arith.addf %346, %348 : vector<1x32xf32>
    %c2_249 = arith.constant 2 : index
    %c0_250 = arith.constant 0 : index
    %c0_251 = arith.constant 0 : index
    %350 = vector.load %arg9[%c2_249, %c0_250, %c0_251] : memref<3x32x32xbf16, #tpu.memory_space<vmem>>, vector<1x32x32xbf16>
    %351 = vector.shape_cast %350 : vector<1x32x32xbf16> to vector<32x32xbf16>
    %cst_252 = arith.constant dense<0.000000e+00> : vector<1x32xf32>
    %352 = tpu.matmul %306, %351, %cst_252 {dimension_numbers = #tpu.dot_dimension_numbers<[1], [0], [0], [1], [0, 0, 1, 1], [], []>} : vector<1x32xbf16>, vector<32x32xbf16>, vector<1x32xf32> -> vector<1x32xf32>
    %c2_253 = arith.constant 2 : index
    %c0_254 = arith.constant 0 : index
    %c0_255 = arith.constant 0 : index
    %353 = vector.load %arg11[%c2_253, %c0_254, %c0_255] : memref<3x1x32xf32, #tpu.memory_space<vmem>>, vector<1x1x32xf32>
    %354 = vector.shape_cast %353 : vector<1x1x32xf32> to vector<1x32xf32>
    %355 = arith.addf %352, %354 : vector<1x32xf32>
    %356 = arith.mulf %325, %349 : vector<1x32xf32>
    %357 = arith.addf %355, %356 : vector<1x32xf32>
    %358 = math.tanh %357 : vector<1x32xf32>
    %cst_256 = arith.constant 1.000000e+00 : f32
    %359 = vector.broadcast %cst_256 : f32 to vector<1x32xf32>
    %360 = arith.subf %359, %343 : vector<1x32xf32>
    %361 = arith.mulf %360, %358 : vector<1x32xf32>
    %362 = arith.mulf %343, %275 : vector<1x32xf32>
    %363 = arith.addf %361, %362 : vector<1x32xf32>
    %364 = arith.index_cast %c3_i32 : i32 to index
    %c0_257 = arith.constant 0 : index
    %365 = vector.load %arg18[%364, %c0_257] : memref<4x32xf32, #tpu.memory_space<vmem>>, vector<1x32xf32>
    tpu.vector_store %arg18[%364, %c0_257], %363 {strides = array<i32>} : memref<4x32xf32, #tpu.memory_space<vmem>>, vector<1x32xf32>,
    %c4_i32 = arith.constant 4 : i32
    %c0_258 = arith.constant 0 : index
    %c0_259 = arith.constant 0 : index
    %366 = vector.load %arg16[%c0_258, %c0_259] : memref<1x32xf32, #tpu.memory_space<vmem>>, vector<1x32xf32>
    tpu.vector_store %arg16[%c0_258, %c0_259], %363 {strides = array<i32>} : memref<1x32xf32, #tpu.memory_space<vmem>>, vector<1x32xf32>,
    %c0_260 = arith.constant 0 : index
    %c0_261 = arith.constant 0 : index
    %367 = vector.load %arg18[%c0_260, %c0_261] : memref<4x32xf32, #tpu.memory_space<vmem>>, vector<4x32xf32>
    %368 = arith.truncf %367 : vector<4x32xf32> to vector<4x32xbf16>
    %c0_262 = arith.constant 0 : index
    %c0_263 = arith.constant 0 : index
    %369 = vector.load %arg13[%c0_262, %c0_263] : memref<32x128xbf16, #tpu.memory_space<vmem>>, vector<32x128xbf16>
    %cst_264 = arith.constant dense<0.000000e+00> : vector<4x128xf32>
    %370 = tpu.matmul %368, %369, %cst_264 {dimension_numbers = #tpu.dot_dimension_numbers<[1], [0], [0], [1], [0, 0, 1, 1], [], []>} : vector<4x32xbf16>, vector<32x128xbf16>, vector<4x128xf32> -> vector<4x128xf32>
    %c0_265 = arith.constant 0 : index
    %c0_266 = arith.constant 0 : index
    %371 = vector.load %arg14[%c0_265, %c0_266] : memref<1x128xf32, #tpu.memory_space<vmem>>, vector<1x128xf32>
    %372 = vector.broadcast %371 : vector<1x128xf32> to vector<4x128xf32>
    %373 = arith.addf %370, %372 : vector<4x128xf32>
    %cst_267 = arith.constant dense<0xFF800000> : vector<4xf32>
    %374 = vector.multi_reduction <maximumf>, %373, %cst_267 [1] : vector<4x128xf32> to vector<4xf32>
    %375 = vector.shape_cast %374 : vector<4xf32> to vector<4x1xf32>
    %376 = vector.broadcast %375 : vector<4x1xf32> to vector<4x128xf32>
    %377 = arith.subf %373, %376 : vector<4x128xf32>
    %378 = math.exp %377 : vector<4x128xf32>
    %379 = vector.broadcast %375 : vector<4x1xf32> to vector<4x128xf32>
    %380 = arith.subf %373, %379 : vector<4x128xf32>
    %cst_268 = arith.constant dense<0.000000e+00> : vector<4xf32>
    %381 = vector.multi_reduction <add>, %378, %cst_268 [1] : vector<4x128xf32> to vector<4xf32>
    %382 = vector.shape_cast %381 : vector<4xf32> to vector<4x1xf32>
    %383 = math.log %382 : vector<4x1xf32>
    %384 = vector.broadcast %383 : vector<4x1xf32> to vector<4x128xf32>
    %385 = arith.subf %380, %384 : vector<4x128xf32>
    %c0_269 = arith.constant 0 : index
    %c0_270 = arith.constant 0 : index
    %386 = vector.load %arg15[%c0_269, %c0_270] : memref<4x128xf32, #tpu.memory_space<vmem>>, vector<4x128xf32>
    tpu.vector_store %arg15[%c0_269, %c0_270], %385 {strides = array<i32>} : memref<4x128xf32, #tpu.memory_space<vmem>>, vector<4x128xf32>,
    return
  }
}

</mosaic_0001>

<bundles_post_ra>
// kernel: tpu_custom_call.1
= control target key start
LH: loop header
LB: loop body
LE: loop exit
PB: predicated region body
PF: predicated region fallthrough
CT: control target
= control target key end

     0   :  { %s4814_s0 = inlined_call_operand.hbm [shape: bf16[4,32], index: 0, kind: input, shape index: {}]   ;;  %s4815_s1 = inlined_call_operand.hbm [shape: f32[1,32], index: 1, kind: input, shape index: {}]   ;;  %s4816_s2 = inlined_call_operand.vmem [shape: bf16[128,32], index: 2, kind: input, shape index: {}]   ;;  %s4817_s3 = inlined_call_operand.hbm [shape: bf16[32,128], index: 3, kind: input, shape index: {}]   ;;  %s4818_s4 = inlined_call_operand.hbm [shape: bf16[32,128], index: 4, kind: input, shape index: {}]   ;;  %s4819_s5 = inlined_call_operand.hbm [shape: f32[1,128], index: 5, kind: input, shape index: {}]   ;;  %s4820_s6 = inlined_call_operand.hbm [shape: bf16[32,32], index: 6, kind: input, shape index: {}]   ;;  %s4821_s7 = inlined_call_operand.hbm [shape: bf16[32,32], index: 7, kind: input, shape index: {}]   ;;  %s4822_s8 = inlined_call_operand.hbm [shape: f32[1,32], index: 8, kind: input, shape index: {}]   ;;  %s4823_s9 = inlined_call_operand.vmem [shape: bf16[3,32,32], index: 9, kind: input, shape index: {}]   ;;  %s4824_s10 = inlined_call_operand.vmem [shape: bf16[3,32,32], index: 10, kind: input, shape index: {}]   ;;  %s4825_s11 = inlined_call_operand.vmem [shape: f32[3,1,32], index: 11, kind: input, shape index: {}]   ;;  %s4826_s12 = inlined_call_operand.hbm [shape: f32[3,1,32], index: 12, kind: input, shape index: {}]   ;;  %s4827_s13 = inlined_call_operand.hbm [shape: bf16[32,128], index: 13, kind: input, shape index: {}]   ;;  %s4828_s14 = inlined_call_operand.vmem [shape: f32[1,128], index: 14, kind: input, shape index: {}]   ;;  %s4829_s15 = inlined_call_operand.hbm [shape: f32[4,128], index: 15, kind: output, shape index: {0}]   ;;  %s4830_s16 = inlined_call_operand.hbm [shape: f32[1,32], index: 16, kind: output, shape index: {1}]   ;;  %s4831_s17 = inlined_call_operand.hbm [shape: f32[4,128], index: 17, kind: output, shape index: {2}]  }
   0x1   :  { %4832 = sst [smem:[#allocation34_spill]] %s4814_s0 }
   0x2   :  { %4833 = sst [smem:[#allocation35_spill]] %s4815_s1 }
   0x3   :  { %23 = vsyncpa [#allocation6], 0 }
   0x4   :  { %24 = vsyncpa [#allocation9], 0 }
   0x5   :  { %25 = vsyncpa [#allocation12], 0 }
   0x6   :  { %26 = vsyncpa [#allocation15], 0 }
   0x7   :  { %27 = vsyncpa [#allocation18], 0 }
   0x8   :  { %28 = vsyncpa [#allocation21], 0 }
   0x9   :  { %29 = vsyncpa [#allocation7], 0 }
   0xa   :  { %30 = vsyncpa [#allocation24], 0  ;;  %s4085_s24 = smov [#allocation8]  }
   0xb   :  { %s47_s25 = sshll.u32 %s4085_s24, 4  ;;  %s48_s25 = int_to_ptr.vmem [resolvable:$true] %s47_s25 }
   0xc   :  { %s3817_s26 = scalar_lea.vmem %s48_s25, 16  ;;  %s3821_s27 = scalar_lea.vmem %s48_s25, 32 }
   0xd   :  { %p3818_p0 = scmp.ne.s32.totalorder %s48_s25, %s3817_s26  ;;  %p3822_p1 = scmp.lt.s32.totalorder %s48_s25, %s48_s25 }
   0xe   :  { %p3823_p2 = scmp.lt.s32.totalorder %s3821_s27, %s3817_s26 }
  0x10   :  { %p3824_p3 = por %p3823_p2, %p3822_p1 }
  0x12   :  { %p3825_p4 = pnand %p3824_p3, %p3818_p0 }
  0x14   :  { %3828 = shalt.err (!%p3825_p4)
}
  0x15   :  { %s4834_s0 = sld [smem:[#allocation35_spill]]  ;;  %s4086_s30 = smov [#allocation11]  }
  0x16   :  { %s70_s18 = sshll.u32 %s4086_s30, 4  ;;  %s4087_s19 = smov [#allocation14]   ;;  %s71_s18 = int_to_ptr.vmem [resolvable:$true] %s70_s18 }
  0x17   :  { %s92_s1 = sshll.u32 %s4087_s19, 4  ;;  %s3837_s20 = scalar_lea.vmem %s71_s18, 256  ;;  %s93_s1 = int_to_ptr.vmem [resolvable:$true] %s92_s1 }
  0x18   :  { %p3838_p5 = scmp.ne.s32.totalorder %s71_s18, %s3837_s20  ;;  %p3842_p6 = scmp.lt.s32.totalorder %s71_s18, %s71_s18 }
  0x19   :  { %p3843_p7 = scmp.lt.s32.totalorder %s3837_s20, %s3837_s20 }
  0x1b   :  { %50 = dma.hbm_to_vmem [thread:$0]  %s4834_s0, 16, %s48_s25, [#allocation9]  }
  0x1c   :  { %p3844_p8 = por %p3843_p7, %p3842_p6 }
  0x1e   :  { %p3845_p9 = pnand %p3844_p8, %p3838_p5 }
  0x20   :  { %3848 = shalt.err (!%p3845_p9)
}
  0x21   :  { %s4088_s21 = smov 64   ;;  %s4089_s22 = smov 4  }
  0x22   :  { %76 = dma.hbm_to_vmem [thread:$0]  %s4818_s4, 256, %s71_s18, [#allocation12], %s4088_s21, %s4088_s21, %s4089_s22  }
  0x23   :  { %s3857_s25 = scalar_lea.vmem %s93_s1, 256  ;;  %p3862_p11 = scmp.lt.s32.totalorder %s93_s1, %s93_s1 }
  0x24   :  { %p3858_p10 = scmp.ne.s32.totalorder %s93_s1, %s3857_s25  ;;  %p3863_p12 = scmp.lt.s32.totalorder %s3857_s25, %s3857_s25 }
  0x26   :  { %p3864_p13 = por %p3863_p12, %p3862_p11 }
  0x28   :  { %p3865_p0 = pnand %p3864_p13, %p3858_p10 }
  0x2a   :  { %3868 = shalt.err (!%p3865_p0)
}
  0x2b   :  { %98 = dma.hbm_to_vmem [thread:$0]  %s4820_s6, 256, %s93_s1, [#allocation15], %s4088_s21, %s4088_s21, %s4089_s22  }
  0x2c   :  { %s4090_s28 = smov [#allocation17]   ;;  %s4091_s0 = smov [#allocation5]  }
  0x2d   :  { %s117_s29 = sshll.u32 %s4090_s28, 4  ;;  %s37_s4 = sshll.u32 %s4091_s0, 4  ;;  %s118_s29 = int_to_ptr.vmem [resolvable:$true] %s117_s29  ;;  %s38_s4 = int_to_ptr.vmem [resolvable:$true] %s37_s4 }
  0x2e   :  { %s3877_s30 = scalar_lea.vmem %s118_s29, 16  ;;  %s3881_s18 = scalar_lea.vmem %s118_s29, 32 }
  0x2f   :  { %p3878_p1 = scmp.ne.s32.totalorder %s118_s29, %s3877_s30  ;;  %p3882_p2 = scmp.lt.s32.totalorder %s118_s29, %s118_s29 }
  0x30   :  { %p3883_p3 = scmp.lt.s32.totalorder %s3881_s18, %s3877_s30 }
  0x32   :  { %p3884_p4 = por %p3883_p3, %p3882_p2 }
  0x34   :  { %p3885_p5 = pnand %p3884_p4, %p3878_p1 }
  0x36   :  { %3888 = shalt.err (!%p3885_p5)
}
  0x37   :  { %120 = dma.hbm_to_vmem [thread:$0]  %s4822_s8, 16, %s118_s29, [#allocation18]  }
  0x38   :  { %s3897_s23 = scalar_lea.vmem %s38_s4, 32  ;;  %p3902_p7 = scmp.lt.s32.totalorder %s38_s4, %s38_s4 }
  0x39   :  { %p3898_p6 = scmp.ne.s32.totalorder %s38_s4, %s3897_s23  ;;  %p3903_p8 = scmp.lt.s32.totalorder %s3897_s23, %s3897_s23 }
  0x3b   :  { %p3904_p9 = por %p3903_p8, %p3902_p7 }
  0x3d   :  { %p3905_p10 = pnand %p3904_p9, %p3898_p6 }
  0x3f   :  { %3908 = shalt.err (!%p3905_p10)
}
  0x40   :  { %s4835_s24 = sld [smem:[#allocation34_spill]]  ;;  %s4092_s25 = smov [#allocation10]  }
  0x41   :  { %s58_s26 = sshll.u32 %s4092_s25, 4  ;;  %s4093_s27 = smov [#allocation13]   ;;  %s59_s26 = int_to_ptr.vmem [resolvable:$true] %s58_s26 }
  0x42   :  { %s83_s28 = sshll.u32 %s4093_s27, 4  ;;  %s3917_s0 = scalar_lea.vmem %s59_s26, 256  ;;  %s84_s28 = int_to_ptr.vmem [resolvable:$true] %s83_s28 }
  0x43   :  { %p3918_p11 = scmp.ne.s32.totalorder %s59_s26, %s3917_s0  ;;  %p3922_p12 = scmp.lt.s32.totalorder %s59_s26, %s59_s26 }
  0x44   :  { %p3923_p13 = scmp.lt.s32.totalorder %s3917_s0, %s3917_s0 }
  0x46   :  { %40 = dma.hbm_to_vmem [thread:$0]  %s4835_s24, 32, %s38_s4, [#allocation6]  }
  0x47   :  { %p3924_p0 = por %p3923_p13, %p3922_p12 }
  0x49   :  { %p3925_p1 = pnand %p3924_p0, %p3918_p11 }
  0x4b   :  { %3928 = shalt.err (!%p3925_p1)
}
  0x4c   :  { %64 = dma.hbm_to_vmem [thread:$0]  %s4817_s3, 256, %s59_s26, [#allocation9], %s4088_s21, %s4088_s21, %s4089_s22  }
  0x4d   :  { %s3937_s4 = scalar_lea.vmem %s84_s28, 16  ;;  %s3941_s30 = scalar_lea.vmem %s84_s28, 32 }
  0x4e   :  { %p3938_p2 = scmp.ne.s32.totalorder %s84_s28, %s3937_s4  ;;  %p3942_p3 = scmp.lt.s32.totalorder %s84_s28, %s84_s28 }
  0x4f   :  { %p3943_p4 = scmp.lt.s32.totalorder %s3941_s30, %s3937_s4 }
  0x51   :  { %p3944_p5 = por %p3943_p4, %p3942_p3 }
  0x53   :  { %p3945_p6 = pnand %p3944_p5, %p3938_p2 }
  0x55   :  { %3948 = shalt.err (!%p3945_p6)
}
  0x56   :  { %86 = dma.hbm_to_vmem [thread:$0]  %s4819_s5, 16, %s84_s28, [#allocation12]  }
  0x57   :  { %s4094_s20 = smov [#allocation16]   ;;  %s4095_s6 = smov [#allocation19]  }
  0x58   :  { %s104_s23 = sshll.u32 %s4094_s20, 4  ;;  %s132_s1 = sshll.u32 %s4095_s6, 4  ;;  %s105_s23 = int_to_ptr.vmem [resolvable:$true] %s104_s23  ;;  %s133_s1 = int_to_ptr.vmem [resolvable:$true] %s132_s1 }
  0x59   :  { %s3957_s24 = scalar_lea.vmem %s105_s23, 256  ;;  %p3962_p8 = scmp.lt.s32.totalorder %s105_s23, %s105_s23 }
  0x5a   :  { %p3958_p7 = scmp.ne.s32.totalorder %s105_s23, %s3957_s24  ;;  %p3963_p9 = scmp.lt.s32.totalorder %s3957_s24, %s3957_s24 }
  0x5c   :  { %p3964_p10 = por %p3963_p9, %p3962_p8 }
  0x5e   :  { %p3965_p11 = pnand %p3964_p10, %p3958_p7 }
  0x60   :  { %3968 = shalt.err (!%p3965_p11)
}
  0x61   :  { %110 = dma.hbm_to_vmem [thread:$0]  %s4821_s7, 256, %s105_s23, [#allocation15], %s4088_s21, %s4088_s21, %s4089_s22  }
  0x62   :  { %s3977_s5 = scalar_lea.vmem %s133_s1, 48  ;;  %s3981_s26 = scalar_lea.vmem %s133_s1, 64 }
  0x63   :  { %p3978_p12 = scmp.ne.s32.totalorder %s133_s1, %s3977_s5  ;;  %p3982_p13 = scmp.lt.s32.totalorder %s133_s1, %s133_s1 }
  0x64   :  { %p3983_p0 = scmp.lt.s32.totalorder %s3981_s26, %s3977_s5 }
  0x66   :  { %p3984_p1 = por %p3983_p0, %p3982_p13 }
  0x68   :  { %p3985_p2 = pnand %p3984_p1, %p3978_p12 }
  0x6a   :  { %3988 = shalt.err (!%p3985_p2)
}
  0x6b   :  { %s4096_s27 = smov 16   ;;  %s4097_s28 = smov 1  }
  0x6c   :  { %138 = dma.hbm_to_vmem [thread:$0]  %s4826_s12, 48, %s133_s1, [#allocation18], %s4096_s27, %s4096_s27, %s4097_s28  }
  0x6d   :  { %s4098_s29 = smov [#allocation20]  }
  0x6e   :  { %s144_s4 = sshll.u32 %s4098_s29, 4  ;;  %s145_s4 = int_to_ptr.vmem [resolvable:$true] %s144_s4 }
  0x6f   :  { %s3997_s30 = scalar_lea.vmem %s145_s4, 256  ;;  %p4002_p4 = scmp.lt.s32.totalorder %s145_s4, %s145_s4 }
  0x70   :  { %p3998_p3 = scmp.ne.s32.totalorder %s145_s4, %s3997_s30  ;;  %p4003_p5 = scmp.lt.s32.totalorder %s3997_s30, %s3997_s30 }
  0x72   :  { %p4004_p6 = por %p4003_p5, %p4002_p4 }
  0x74   :  { %p4005_p7 = pnand %p4004_p6, %p3998_p3 }
  0x76   :  { %4008 = shalt.err (!%p4005_p7)
}
  0x77   :  { %150 = dma.hbm_to_vmem [thread:$0]  %s4827_s13, 256, %s145_s4, [#allocation21], %s4088_s21, %s4088_s21, %s4089_s22  }
  0x78   :  { %4069 = dma.done.wait [#allocation6], 32  }
  0x79   :  { %4070 = vsyncadd [#allocation6], 4294967264 }
  0x7a   :  { %4071 = dma.done.wait [#allocation9], 272  }
  0x7b   :  { %4072 = vsyncadd [#allocation9], 4294967024 }
  0x7c   :  { %4073 = dma.done.wait [#allocation12], 272  }
  0x7d   :  { %4074 = vsyncadd [#allocation12], 4294967024 }
  0x7e   :  { %4075 = dma.done.wait [#allocation15], 512  }
  0x7f   :  { %4076 = vsyncadd [#allocation15], 4294966784 }
  0x80   :  { %4077 = dma.done.wait [#allocation18], 64  }
  0x81   :  { %4078 = vsyncadd [#allocation18], 4294967232 }
  0x82   :  { %4079 = dma.done.wait [#allocation21], 256  }
  0x83   :  { %4080 = vsyncadd [#allocation21], 4294967040  ;;  %v4099_v0 = vmov 0.0   ;;  %vm4100_vm0 = vmmov 0   ;;  %v3647_v1 = vld [vmem:[#allocation10 + $0x8] sm:$0xff]   ;;  %v3648_v2 = vld [vmem:[#allocation10] sm:$0xff]  }
  0x84   :  { %3268 = vmatprep.subr.bf16.mxu0 %v4099_v0  ;;  %3272 = vmatprep.mubr.msk.bf16.mxu0 %vm4100_vm0, %v4099_v0  ;;  %v184_v3 = vld [vmem:[#allocation5] sm:$0x3]  ;;  %vm208_vm1 = vcmask 261120   ;;  %v3650_v5 = vld [vmem:[#allocation11] sm:$0xff]   ;;  %v4247_v6 = vld [vmem:[#allocation8] sm:$0x1] }
  0x85   :  { %3276 = vmatprep.subr.bf16.mxu1 %v4099_v0  ;;  %3280 = vmatprep.mubr.msk.bf16.mxu1 %vm4100_vm0, %v4099_v0  ;;  %v3649_v4 = vld [vmem:[#allocation11 + $0x8] sm:$0xff]   ;;  %v4255_v7 = vpack.c.bf16 %v4247_v6, %v4247_v6  ;;  %v2907_v8 = vld [vmem:[#allocation13] ss:$0 sm:$0xff]  ;;  %vm381_vm2 = vcmask 1040384   ;;  %v3651_v21 = vld [vmem:[#allocation14 + $0x8] sm:$0xff]   ;;  %vm316_vm3 = vcmask 257024  }
  0x86   :  { %3269 = vmatpush3.bf16.msra.mxu0 %v3647_v1  ;;  %3277 = vmatpush3.bf16.msra.mxu1 %v3651_v21  ;;  %v3652_v22 = vld [vmem:[#allocation14] sm:$0xff]   ;;  %v3655_v25 = vld [vmem:[%s4816_s2 + $0x28] sm:$0xff]   ;;  %v3656_v26 = vld [vmem:[%s4816_s2 + $0x20] sm:$0xff]   ;;  %vm939_vm4 = vcmask 253952   ;;  %vm2846_vm5 = vcmask 1043456   ;;  %s4101_s30 = smov [#allocation23]  }
  0x87   :  { %3270 = vmatprep.subr.bf16.mxu0 %v4099_v0  ;;  %3278 = vmatprep.subr.bf16.mxu1 %v4099_v0  ;;  %v3653_v23 = vld [vmem:[%s4816_s2 + $0x38] sm:$0xff]   ;;  %v3654_v24 = vld [vmem:[%s4816_s2 + $0x30] sm:$0xff]   ;;  %v3659_v34 = vld [vmem:[%s4816_s2 + $0x8] sm:$0xff]   ;;  %s2876_s7 = sshll.u32 %s4101_s30, 4  ;;  %s2877_s7 = int_to_ptr.vmem [resolvable:$true] %s2876_s7 }
  0x88   :  { %v3657_v32 = vld [vmem:[%s4816_s2 + $0x18] sm:$0xff]   ;;  %v3658_v33 = vld [vmem:[%s4816_s2 + $0x10] sm:$0xff]   ;;  %v3660_v35 = vld [vmem:[%s4816_s2] sm:$0xff]   ;;  %s4009_s18 = scalar_lea.vmem %s2877_s7, 16  ;;  %p4014_p9 = scmp.lt.s32.totalorder %s2877_s7, %s2877_s7 }
  0x89   :  { %v3661_v36 = vld [vmem:[#allocation16 + $0x8] sm:$0xff]   ;;  %v3662_v37 = vld [vmem:[#allocation16] sm:$0xff]   ;;  %v2911_v38 = vld [vmem:[#allocation17] ss:$0 sm:$0xff]  ;;  %p4010_p8 = scmp.ne.s32.totalorder %s2877_s7, %s4009_s18 }
  0x8a   :  { %3271 = vmatpush3.bf16.msra.mxu0 %v3648_v2  ;;  %3279 = vmatpush3.bf16.msra.mxu1 %v3652_v22  ;;  %v3663_v48 = vld [vmem:[%s4824_s10 + $0x18] sm:$0xff]   ;;  %v3664_v49 = vld [vmem:[%s4824_s10 + $0x10] sm:$0xff]   ;;  %v3665_v51 = vld [vmem:[%s4823_s9 + $0x8] sm:$0xff]  }
  0x8b   :  { %3284 = vmatprep.subr.bf16.mxu0 %v4099_v0  ;;  %3292 = vmatprep.subr.bf16.mxu1 %v4099_v0  ;;  %v3666_v56 = vld [vmem:[%s4823_s9 + $0x28] sm:$0xff]   ;;  %v3667_v57 = vld [vmem:[%s4823_s9] sm:$0xff]  }
  0x8c   :  { %v3668_v58 = vld [vmem:[%s4823_s9 + $0x20] sm:$0xff]  }
  0x8d   :  { %3273 = vmatmul.mubr.msk.bf16.vlgmr.msra.gmra.mxu0 %vm208_vm1, %v184_v3  ;;  %3281 = vmatmul.mubr.msk.bf16.vlgmr.msra.gmra.mxu1 %vm208_vm1, %v184_v3  ;;  %v567_v22 = vld [vmem:[%s4825_s11] sm:$0x1] }
  0x8e   :  { %3285 = vmatpush3.bf16.msra.mxu0 %v3649_v4  ;;  %3288 = vmatprep.mubr.msk.bf16.mxu0 %vm4100_vm0, %v4099_v0 }
  0x8f   :  { %3286 = vmatprep.subr.bf16.mxu0 %v4099_v0  ;;  %3293 = vmatpush3.bf16.msra.mxu1 %v3653_v23 }
  0x90   :  { %3308 = vmatprep.mubr.msk.bf16.mxu1 %vm4100_vm0, %v4099_v0  ;;  %3294 = vmatprep.subr.bf16.mxu1 %v4099_v0 }
  0x92   :  { %3287 = vmatpush3.bf16.msra.mxu0 %v3650_v5 }
  0x93   :  { %3312 = vmatprep.subr.bf16.mxu0 %v4099_v0  ;;  %3295 = vmatpush3.bf16.msra.mxu1 %v3654_v24 }
  0x94   :  { %3296 = vmatprep.subr.bf16.mxu1 %v4099_v0 }
  0x95   :  { %3289 = vmatmul.mubr.msk.bf16.vlgmr.msra.gmra.mxu0 %vm208_vm1, %v4255_v7 }
  0x96   :  { %3316 = vmatprep.mubr.msk.bf16.mxu0 %vm4100_vm0, %v4099_v0  ;;  %3313 = vmatpush3.bf16.msra.mxu0 %v3661_v36 }
  0x97   :  { %3297 = vmatpush3.bf16.msra.mxu1 %v3655_v25  ;;  %3314 = vmatprep.subr.bf16.mxu0 %v4099_v0 }
  0x98   :  { %3298 = vmatprep.subr.bf16.mxu1 %v4099_v0 }
  0x9a   :  { %3315 = vmatpush3.bf16.msra.mxu0 %v3662_v37 }
  0x9b   :  { %3299 = vmatpush3.bf16.msra.mxu1 %v3656_v26  ;;  %3320 = vmatprep.subr.bf16.mxu0 %v4099_v0 }
  0x9c   :  { %3300 = vmatprep.subr.bf16.mxu1 %v4099_v0 }
  0x9f   :  { %3301 = vmatpush3.bf16.msra.mxu1 %v3657_v32 }
  0xa0   :  { %3302 = vmatprep.subr.bf16.mxu1 %v4099_v0 }
  0xa3   :  { %3303 = vmatpush3.bf16.msra.mxu1 %v3658_v33 }
  0xa4   :  { %3304 = vmatprep.subr.bf16.mxu1 %v4099_v0 }
  0xa7   :  { %3305 = vmatpush3.bf16.msra.mxu1 %v3659_v34 }
  0xa8   :  { %3306 = vmatprep.subr.bf16.mxu1 %v4099_v0 }
  0xab   :  { %3307 = vmatpush3.bf16.msra.mxu1 %v3660_v35  ;;  %v2940_v35 = vld [vmem:[%s4825_s11 + $0x1] sm:$0x1] }
  0xac   :  { %3344 = vmatprep.subr.bf16.mxu1 %v4099_v0 }
 0x14d   :  { %v246_v9 = vpop.f32.mrf.mxu0  ;;  %v310_v39 = vpop.f32.mrf.mxu1 }
 0x14e   :  { %v247_v10 = vadd.f32 %v2907_v8, %v246_v9  ;;  %v311_v40 = vadd.f32 %v2911_v38, %v310_v39  ;;  %v3669_v8 = vld [vmem:[%s4824_s10 + $0x8] sm:$0xff]   ;;  %v806_v38 = vld [vmem:[#allocation19 + $0x1] sm:$0x1] }
 0x14f   :  { %v3274_v11 = vpop.f32.mrf.mxu0  ;;  %v3282_v41 = vpop.f32.mrf.mxu1 }
 0x150   :  { %252 = vst [vmem:[#allocation3] sm:$0xf] %v247_v10  ;;  %317 = vst.msk [vmem:[#allocation4] sm:$0xf] %vm316_vm3, %v311_v40  ;;  %v3670_v11 = vld [vmem:[%s4824_s10] sm:$0xff]  }
 0x151   :  { %v249_v12 = vpop.f32.mrf.mxu0  ;;  %v313_v42 = vpop.f32.mrf.mxu1 }
 0x152   :  { %v3671_v12 = vld [vmem:[%s4823_s9 + $0x18] sm:$0xff]  }
 0x153   :  { %v3275_v13 = vpop.f32.mrf.mxu0  ;;  %v3283_v43 = vpop.f32.mrf.mxu1 }
 0x154   :  { %v3672_v13 = vld [vmem:[%s4823_s9 + $0x10] sm:$0xff]  }
 0x155   :  { %v374_v14 = vpop.f32.mrf.mxu0 }
 0x157   :  { %v320_v15 = vld [vmem:[#allocation3] sm:$0x1]  ;;  %v3290_v16 = vpop.f32.mrf.mxu0  ;;  %v499_v63 = vld [vmem:[#allocation4] sm:$0x1] }
 0x158   :  { %v380_v17 = vadd.f32 %v374_v14, %v320_v15  ;;  %v3673_v14 = vld [vmem:[%s4824_s10 + $0x28] sm:$0xff]   ;;  %v3674_v15 = vld [vmem:[%s4824_s10 + $0x20] sm:$0xff]  }
 0x159   :  { %v377_v18 = vpop.f32.mrf.mxu0  ;;  %v3675_v16 = vld [vmem:[#allocation11 + $0x8] sm:$0xff]  }
 0x15a   :  { %v382_v19 = vsel %vm381_vm2, %v380_v17, -inf }
 0x15b   :  { %383 = vmax.xlane.f32.xlu0 %v382_v19  ;;  %v3291_v20 = vpop.f32.mrf.mxu0 }
 0x1e4   :  { %v384_v27 = vpop.xlane.xlu0 %383 }
 0x1e5   :  { %v385_v28 = vsub.f32 %v380_v17, %v384_v27  ;;  %v3676_v17 = vld [vmem:[#allocation11] sm:$0xff]  }
 0x1e7   :  { %v386_v29 = vmul.f32 1.442695, %v385_v28  ;;  %v680_v28 = vld [vmem:[#allocation19] sm:$0x1] }
 0x1e9   :  { %3749 = vpow2.f32 %v386_v29 }
 0x1f6   :  { %v3750_v30 = vpop.eup %3749 }
 0x1f7   :  { %v388_v31 = vsel %vm381_vm2, %v3750_v30, 0.0 }
 0x1f8   :  { %389 = vadd.xlane.f32.xlu0 %v388_v31 }
 0x281   :  { %v390_v44 = vpop.xlane.xlu0 %389 }
 0x282   :  { %3751 = vrcp.f32 %v390_v44 }
 0x28f   :  { %v3752_v45 = vpop.eup %3751 }
 0x290   :  { %v392_v46 = vmul.f32 %v3752_v45, %v3750_v30 }
 0x292   :  { %393 = vst [vmem:[#allocation25] sm:$0x1] %v392_v46  ;;  %v394_v47 = vpack.c.bf16 %v392_v46, %v392_v46 }
 0x294   :  { %3309 = vmatmul.mubr.bf16.vlgmr.msra.gmra.mxu1 %v394_v47 }
 0x295   :  { %3348 = vmatprep.mubr.msk.bf16.mxu1 %vm4100_vm0, %v4099_v0  ;;  %3345 = vmatpush3.bf16.msra.mxu1 %v3663_v48 }
 0x296   :  { %3346 = vmatprep.subr.bf16.mxu1 %v4099_v0 }
 0x299   :  { %3347 = vmatpush3.bf16.msra.mxu1 %v3664_v49 }
 0x29a   :  { %3360 = vmatprep.subr.bf16.mxu1 %v4099_v0 }
 0x29c   :  { %3349 = vmatmul.mubr.msk.bf16.vlgmr.msra.gmra.mxu1 %vm208_vm1, %v4255_v7 }
 0x29d   :  { %3364 = vmatprep.mubr.msk.bf16.mxu1 %vm4100_vm0, %v4099_v0  ;;  %3361 = vmatpush3.bf16.msra.mxu1 %v3666_v56 }
 0x29e   :  { %3362 = vmatprep.subr.bf16.mxu1 %v4099_v0 }
 0x2a1   :  { %3363 = vmatpush3.bf16.msra.mxu1 %v3668_v58 }
 0x2a2   :  { %3376 = vmatprep.subr.bf16.mxu1 %v4099_v0 }
 0x354   :  { %v493_v50 = vpop.f32.mrf.mxu1 }
 0x355   :  { %v500_v52 = vpack.c.bf16 %v493_v50, %v493_v50 }
 0x356   :  { %v3310_v53 = vpop.f32.mrf.mxu1 }
 0x357   :  { %3317 = vmatmul.mubr.msk.bf16.vlgmr.msra.gmra.mxu0 %vm208_vm1, %v500_v52  ;;  %v820_v52 = vld [vmem:[#allocation19 + $0x2] sm:$0x1] }
 0x358   :  { %v496_v54 = vpop.f32.mrf.mxu1  ;;  %3321 = vmatpush3.bf16.msra.mxu0 %v3665_v51  ;;  %3324 = vmatprep.mubr.msk.bf16.mxu0 %vm4100_vm0, %v4099_v0 }
 0x359   :  { %3322 = vmatprep.subr.bf16.mxu0 %v4099_v0 }
 0x35a   :  { %v3311_v55 = vpop.f32.mrf.mxu1 }
 0x35b   :  { %v2963_v55 = vld [vmem:[%s4825_s11 + $0x2] sm:$0x1] }
 0x35c   :  { %3323 = vmatpush3.bf16.msra.mxu0 %v3667_v57  ;;  %v4336_v59 = vpop.f32.mrf.mxu1 }
 0x35d   :  { %3328 = vmatprep.subr.bf16.mxu0 %v4099_v0 }
 0x35e   :  { %v3350_v60 = vpop.f32.mrf.mxu1 }
 0x360   :  { %v801_v61 = vpop.f32.mrf.mxu1 }
 0x362   :  { %v3351_v62 = vpop.f32.mrf.mxu1 }
 0x417   :  { %v554_v1 = vpop.f32.mrf.mxu0 }
 0x418   :  { %v560_v2 = vadd.f32 %v554_v1, %v499_v63 }
 0x419   :  { %v3318_v3 = vpop.f32.mrf.mxu0 }
 0x41a   :  { %v561_v4 = vmax.f32 %v560_v2, 0.0 }
 0x41b   :  { %v557_v5 = vpop.f32.mrf.mxu0 }
 0x41c   :  { %v562_v9 = vpack.c.bf16 %v561_v4, %v561_v4  ;;  %v942_v4 = vld [vmem:[#allocation3 + $0x1] sm:$0x1] }
 0x41d   :  { %v3319_v10 = vpop.f32.mrf.mxu0 }
 0x41e   :  { %3325 = vmatmul.mubr.msk.bf16.vlgmr.msra.gmra.mxu0 %vm208_vm1, %v562_v9  ;;  %3365 = vmatmul.mubr.msk.bf16.vlgmr.msra.gmra.mxu1 %vm208_vm1, %v562_v9 }
 0x41f   :  { %3329 = vmatpush3.bf16.msra.mxu0 %v3669_v8  ;;  %3332 = vmatprep.mubr.msk.bf16.mxu0 %vm4100_vm0, %v4099_v0 }
 0x420   :  { %3330 = vmatprep.subr.bf16.mxu0 %v4099_v0  ;;  %3392 = vmatprep.mubr.msk.bf16.mxu1 %vm4100_vm0, %v4099_v0 }
 0x423   :  { %3331 = vmatpush3.bf16.msra.mxu0 %v3670_v11 }
 0x424   :  { %3336 = vmatprep.subr.bf16.mxu0 %v4099_v0 }
 0x426   :  { %3333 = vmatmul.mubr.msk.bf16.vlgmr.msra.gmra.mxu0 %vm208_vm1, %v4255_v7 }
 0x427   :  { %3337 = vmatpush3.bf16.msra.mxu0 %v3671_v12  ;;  %3340 = vmatprep.mubr.msk.bf16.mxu0 %vm4100_vm0, %v4099_v0  ;;  %v3677_v12 = vld [vmem:[%s4816_s2 + $0x38] sm:$0xff]  }
 0x428   :  { %3338 = vmatprep.subr.bf16.mxu0 %v4099_v0  ;;  %3377 = vmatpush3.bf16.msra.mxu1 %v3677_v12 }
 0x429   :  { %3378 = vmatprep.subr.bf16.mxu1 %v4099_v0 }
 0x42b   :  { %3339 = vmatpush3.bf16.msra.mxu0 %v3672_v13  ;;  %v3678_v13 = vld [vmem:[%s4816_s2 + $0x30] sm:$0xff]  }
 0x42c   :  { %3352 = vmatprep.subr.bf16.mxu0 %v4099_v0  ;;  %3379 = vmatpush3.bf16.msra.mxu1 %v3678_v13 }
 0x42d   :  { %3380 = vmatprep.subr.bf16.mxu1 %v4099_v0 }
 0x42e   :  { %3341 = vmatmul.mubr.msk.bf16.vlgmr.msra.gmra.mxu0 %vm208_vm1, %v562_v9 }
 0x42f   :  { %3353 = vmatpush3.bf16.msra.mxu0 %v3673_v14  ;;  %3356 = vmatprep.mubr.msk.bf16.mxu0 %vm4100_vm0, %v4099_v0  ;;  %v3679_v14 = vld [vmem:[%s4816_s2 + $0x28] sm:$0xff]  }
 0x430   :  { %3354 = vmatprep.subr.bf16.mxu0 %v4099_v0  ;;  %3381 = vmatpush3.bf16.msra.mxu1 %v3679_v14 }
 0x431   :  { %3382 = vmatprep.subr.bf16.mxu1 %v4099_v0 }
 0x433   :  { %3355 = vmatpush3.bf16.msra.mxu0 %v3674_v15  ;;  %v3680_v15 = vld [vmem:[%s4816_s2 + $0x20] sm:$0xff]  }
 0x434   :  { %3368 = vmatprep.subr.bf16.mxu0 %v4099_v0  ;;  %3383 = vmatpush3.bf16.msra.mxu1 %v3680_v15 }
 0x435   :  { %3384 = vmatprep.subr.bf16.mxu1 %v4099_v0 }
 0x436   :  { %3357 = vmatmul.mubr.msk.bf16.vlgmr.msra.gmra.mxu0 %vm208_vm1, %v4255_v7 }
 0x437   :  { %3372 = vmatprep.mubr.msk.bf16.mxu0 %vm4100_vm0, %v4099_v0  ;;  %3369 = vmatpush3.bf16.msra.mxu0 %v3675_v16 }
 0x438   :  { %3370 = vmatprep.subr.bf16.mxu0 %v4099_v0 }
 0x43b   :  { %3371 = vmatpush3.bf16.msra.mxu0 %v3676_v17 }
 0x43c   :  { %3396 = vmatprep.subr.bf16.mxu0 %v4099_v0 }
 0x4de   :  { %v617_v18 = vpop.f32.mrf.mxu0  ;;  %v926_v19 = vpop.f32.mrf.mxu1 }
 0x4df   :  { %v618_v26 = vadd.f32 %v617_v18, %v567_v22  ;;  %v927_v57 = vadd.f32 %v2963_v55, %v926_v19  ;;  %v3682_v22 = vld [vmem:[%s4816_s2 + $0x10] sm:$0xff]   ;;  %v3695_v55 = vld [vmem:[%s4823_s9 + $0x18] sm:$0xff]  }
 0x4e0   :  { %v3326_v20 = vpop.f32.mrf.mxu0  ;;  %v3366_v21 = vpop.f32.mrf.mxu1 }
 0x4e1   :  { %v3681_v21 = vld [vmem:[%s4816_s2 + $0x18] sm:$0xff]  }
 0x4e2   :  { %v620_v7 = vpop.f32.mrf.mxu0  ;;  %v929_v23 = vpop.f32.mrf.mxu1  ;;  %3385 = vmatpush3.bf16.msra.mxu1 %v3681_v21  ;;  %v1423_v21 = vld [vmem:[#allocation19 + $0x1] sm:$0x1] }
 0x4e3   :  { %3386 = vmatprep.subr.bf16.mxu1 %v4099_v0  ;;  %v3683_v7 = vld [vmem:[%s4816_s2 + $0x8] sm:$0xff]   ;;  %v3684_v23 = vld [vmem:[%s4816_s2] sm:$0xff]  }
 0x4e4   :  { %v3327_v24 = vpop.f32.mrf.mxu0  ;;  %v3367_v25 = vpop.f32.mrf.mxu1 }
 0x4e5   :  { %v3687_v24 = vld [vmem:[#allocation16 + $0x8] sm:$0xff]   ;;  %v3688_v25 = vld [vmem:[#allocation16] sm:$0xff]  }
 0x4e6   :  { %v673_v27 = vpop.f32.mrf.mxu0  ;;  %3387 = vmatpush3.bf16.msra.mxu1 %v3682_v22 }
 0x4e7   :  { %v679_v29 = vadd.f32 %v673_v27, %v618_v26  ;;  %3388 = vmatprep.subr.bf16.mxu1 %v4099_v0 }
 0x4e8   :  { %v3334_v30 = vpop.f32.mrf.mxu0 }
 0x4e9   :  { %v681_v31 = vadd.f32 %v680_v28, %v679_v29  ;;  %v3685_v29 = vld [vmem:[%s4824_s10 + $0x18] sm:$0xff]  }
 0x4ea   :  { %v676_v32 = vpop.f32.mrf.mxu0  ;;  %3389 = vmatpush3.bf16.msra.mxu1 %v3683_v7 }
 0x4eb   :  { %v2935_v33 = vmul.f32 -1.442695, %v681_v31  ;;  %3390 = vmatprep.subr.bf16.mxu1 %v4099_v0  ;;  %v3686_v31 = vld [vmem:[%s4824_s10 + $0x10] sm:$0xff]  }
 0x4ec   :  { %v3335_v34 = vpop.f32.mrf.mxu0 }
 0x4ed   :  { %3753 = vpow2.f32 %v2935_v33  ;;  %v3689_v33 = vld [vmem:[%s4823_s9 + $0x8] sm:$0xff]  }
 0x4ee   :  { %v741_v36 = vpop.f32.mrf.mxu0  ;;  %3391 = vmatpush3.bf16.msra.mxu1 %v3684_v23 }
 0x4ef   :  { %v742_v37 = vadd.f32 %v2940_v35, %v741_v36  ;;  %3428 = vmatprep.subr.bf16.mxu1 %v4099_v0 }
 0x4f0   :  { %v3342_v39 = vpop.f32.mrf.mxu0 }
 0x4f1   :  { %v804_v40 = vadd.f32 %v4336_v59, %v742_v37 }
 0x4f2   :  { %v744_v41 = vpop.f32.mrf.mxu0 }
 0x4f3   :  { %v807_v42 = vadd.f32 %v806_v38, %v804_v40 }
 0x4f4   :  { %v3343_v43 = vpop.f32.mrf.mxu0 }
 0x4f5   :  { %v2951_v44 = vmul.f32 -1.442695, %v807_v42  ;;  %v3690_v42 = vld [vmem:[%s4823_s9 + $0x28] sm:$0xff]   ;;  %v3691_v43 = vld [vmem:[%s4823_s9] sm:$0xff]  }
 0x4f6   :  { %v867_v45 = vpop.f32.mrf.mxu0 }
 0x4f7   :  { %3755 = vpow2.f32 %v2951_v44  ;;  %v868_v54 = vadd.f32 %v867_v45, %v820_v52  ;;  %v3692_v44 = vld [vmem:[%s4823_s9 + $0x20] sm:$0xff]   ;;  %v1120_v45 = vld [vmem:[#allocation4 + $0x1] sm:$0x1] }
 0x4f8   :  { %v3358_v46 = vpop.f32.mrf.mxu0 }
 0x4fa   :  { %v3754_v47 = vpop.eup %3753  ;;  %v870_v48 = vpop.f32.mrf.mxu0 }
 0x4fb   :  { %v685_v49 = vadd.f32 1.0, %v3754_v47 }
 0x4fc   :  { %v3359_v50 = vpop.f32.mrf.mxu0 }
 0x4fd   :  { %3757 = vrcp.f32 %v685_v49 }
 0x504   :  { %v3756_v51 = vpop.eup %3755 }
 0x505   :  { %v811_v53 = vadd.f32 1.0, %v3756_v51  ;;  %v3693_v51 = vld [vmem:[%s4824_s10 + $0x8] sm:$0xff]  }
 0x507   :  { %3759 = vrcp.f32 %v811_v53 }
 0x50a   :  { %v3758_v56 = vpop.eup %3757 }
 0x50b   :  { %v932_v58 = vmul.f32 %v3758_v56, %v868_v54  ;;  %v3694_v54 = vld [vmem:[%s4824_s10] sm:$0xff]   ;;  %v3696_v56 = vld [vmem:[%s4823_s9 + $0x10] sm:$0xff]  }
 0x50d   :  { %v933_v59 = vadd.f32 %v932_v58, %v927_v57  ;;  %v3697_v57 = vld [vmem:[%s4824_s10 + $0x28] sm:$0xff]   ;;  %v3698_v58 = vld [vmem:[%s4824_s10 + $0x20] sm:$0xff]  }
 0x50f   :  { %3761 = vtanh.f32 %v933_v59  ;;  %v3699_v59 = vld [vmem:[#allocation11 + $0x8] sm:$0xff]  }
 0x514   :  { %v3760_v60 = vpop.eup %3759 }
 0x515   :  { %v935_v61 = vsub.f32 1.0, %v3760_v60  ;;  %v937_v1 = vmul.f32 %v3760_v60, %v4247_v6  ;;  %v3700_v60 = vld [vmem:[#allocation11] sm:$0xff]  }
 0x51c   :  { %v3762_v62 = vpop.eup %3761 }
 0x51d   :  { %v936_v63 = vmul.f32 %v3762_v62, %v935_v61 }
 0x51f   :  { %v4392_v2 = vadd.f32 %v937_v1, %v936_v63 }
 0x521   :  { %940 = vst.msk [vmem:[#allocation2] sm:$0x1] %vm939_vm4, %v4392_v2  ;;  %v4398_v3 = vpack.c.bf16 %v4392_v2, %v4392_v2 }
 0x523   :  { %3373 = vmatmul.mubr.msk.bf16.vlgmr.msra.gmra.mxu0 %vm208_vm1, %v4398_v3 }
 0x524   :  { %3400 = vmatprep.mubr.msk.bf16.mxu0 %vm4100_vm0, %v4099_v0  ;;  %3397 = vmatpush3.bf16.msra.mxu0 %v3687_v24 }
 0x525   :  { %3398 = vmatprep.subr.bf16.mxu0 %v4099_v0 }
 0x528   :  { %3399 = vmatpush3.bf16.msra.mxu0 %v3688_v25 }
 0x529   :  { %3404 = vmatprep.subr.bf16.mxu0 %v4099_v0 }
 0x5e3   :  { %v996_v5 = vpop.f32.mrf.mxu0 }
 0x5e4   :  { %v1002_v8 = vadd.f32 %v996_v5, %v942_v4  ;;  %v1188_v4 = vld [vmem:[%s4825_s11] sm:$0x1] }
 0x5e5   :  { %v3374_v6 = vpop.f32.mrf.mxu0 }
 0x5e6   :  { %v1003_v9 = vsel %vm381_vm2, %v1002_v8, -inf }
 0x5e7   :  { %1004 = vmax.xlane.f32.xlu1 %v1003_v9  ;;  %v999_v10 = vpop.f32.mrf.mxu0 }
 0x5e9   :  { %v3375_v11 = vpop.f32.mrf.mxu0 }
 0x5ea   :  { %v1301_v11 = vld [vmem:[#allocation19] sm:$0x1] }
 0x670   :  { %v1005_v16 = vpop.xlane.xlu1 %1004 }
 0x671   :  { %v1006_v17 = vsub.f32 %v1002_v8, %v1005_v16 }
 0x673   :  { %v1007_v18 = vmul.f32 1.442695, %v1006_v17 }
 0x675   :  { %3763 = vpow2.f32 %v1007_v18  ;;  %v2992_v18 = vld [vmem:[%s4825_s11 + $0x1] sm:$0x1] }
 0x682   :  { %v3764_v19 = vpop.eup %3763 }
 0x683   :  { %v1009_v20 = vsel %vm381_vm2, %v3764_v19, 0.0 }
 0x684   :  { %1010 = vadd.xlane.f32.xlu1 %v1009_v20 }
 0x70d   :  { %v1011_v26 = vpop.xlane.xlu1 %1010 }
 0x70e   :  { %3765 = vrcp.f32 %v1011_v26 }
 0x71b   :  { %v3766_v27 = vpop.eup %3765 }
 0x71c   :  { %v1013_v28 = vmul.f32 %v3766_v27, %v3764_v19 }
 0x71e   :  { %1014 = vst [vmem:[#allocation25 + $0x1] sm:$0x1] %v1013_v28  ;;  %v1015_v30 = vpack.c.bf16 %v1013_v28, %v1013_v28 }
 0x720   :  { %3393 = vmatmul.mubr.bf16.vlgmr.msra.gmra.mxu1 %v1015_v30 }
 0x721   :  { %3429 = vmatpush3.bf16.msra.mxu1 %v3685_v29  ;;  %3432 = vmatprep.mubr.msk.bf16.mxu1 %vm4100_vm0, %v4099_v0 }
 0x722   :  { %3430 = vmatprep.subr.bf16.mxu1 %v4099_v0 }
 0x725   :  { %3431 = vmatpush3.bf16.msra.mxu1 %v3686_v31 }
 0x726   :  { %3444 = vmatprep.subr.bf16.mxu1 %v4099_v0 }
 0x728   :  { %3433 = vmatmul.mubr.msk.bf16.vlgmr.msra.gmra.mxu1 %vm208_vm1, %v4398_v3 }
 0x729   :  { %3448 = vmatprep.mubr.msk.bf16.mxu1 %vm4100_vm0, %v4099_v0  ;;  %3445 = vmatpush3.bf16.msra.mxu1 %v3690_v42 }
 0x72a   :  { %3446 = vmatprep.subr.bf16.mxu1 %v4099_v0 }
 0x72d   :  { %3447 = vmatpush3.bf16.msra.mxu1 %v3692_v44 }
 0x72e   :  { %3460 = vmatprep.subr.bf16.mxu1 %v4099_v0 }
 0x7e0   :  { %v1114_v32 = vpop.f32.mrf.mxu1 }
 0x7e1   :  { %v1121_v34 = vpack.c.bf16 %v1114_v32, %v1114_v32 }
 0x7e2   :  { %v3394_v35 = vpop.f32.mrf.mxu1 }
 0x7e3   :  { %3401 = vmatmul.mubr.msk.bf16.vlgmr.msra.gmra.mxu0 %vm208_vm1, %v1121_v34  ;;  %v1435_v34 = vld [vmem:[#allocation19 + $0x2] sm:$0x1] }
 0x7e4   :  { %v1117_v36 = vpop.f32.mrf.mxu1  ;;  %3405 = vmatpush3.bf16.msra.mxu0 %v3689_v33  ;;  %3408 = vmatprep.mubr.msk.bf16.mxu0 %vm4100_vm0, %v4099_v0 }
 0x7e5   :  { %3406 = vmatprep.subr.bf16.mxu0 %v4099_v0  ;;  %v3015_v36 = vld [vmem:[%s4825_s11 + $0x2] sm:$0x1] }
 0x7e6   :  { %v3395_v37 = vpop.f32.mrf.mxu1 }
 0x7e8   :  { %v4461_v38 = vpop.f32.mrf.mxu1  ;;  %3407 = vmatpush3.bf16.msra.mxu0 %v3691_v43 }
 0x7e9   :  { %3412 = vmatprep.subr.bf16.mxu0 %v4099_v0 }
 0x7ea   :  { %v3434_v39 = vpop.f32.mrf.mxu1 }
 0x7ec   :  { %v1419_v40 = vpop.f32.mrf.mxu1 }
 0x7ee   :  { %v3435_v41 = vpop.f32.mrf.mxu1 }
 0x8a3   :  { %v1175_v46 = vpop.f32.mrf.mxu0 }
 0x8a4   :  { %v1181_v47 = vadd.f32 %v1175_v46, %v1120_v45 }
 0x8a5   :  { %v3402_v48 = vpop.f32.mrf.mxu0 }
 0x8a6   :  { %v1182_v49 = vmax.f32 %v1181_v47, 0.0 }
 0x8a7   :  { %v1178_v50 = vpop.f32.mrf.mxu0 }
 0x8a8   :  { %v1183_v52 = vpack.c.bf16 %v1182_v49, %v1182_v49  ;;  %v1554_v49 = vld [vmem:[#allocation3 + $0x2] sm:$0x1] }
 0x8a9   :  { %v3403_v53 = vpop.f32.mrf.mxu0 }
 0x8aa   :  { %3409 = vmatmul.mubr.msk.bf16.vlgmr.msra.gmra.mxu0 %vm208_vm1, %v1183_v52  ;;  %3449 = vmatmul.mubr.msk.bf16.vlgmr.msra.gmra.mxu1 %vm208_vm1, %v1183_v52 }
 0x8ab   :  { %3413 = vmatpush3.bf16.msra.mxu0 %v3693_v51  ;;  %3416 = vmatprep.mubr.msk.bf16.mxu0 %vm4100_vm0, %v4099_v0 }
 0x8ac   :  { %3414 = vmatprep.subr.bf16.mxu0 %v4099_v0  ;;  %3476 = vmatprep.mubr.msk.bf16.mxu1 %vm4100_vm0, %v4099_v0 }
 0x8af   :  { %3415 = vmatpush3.bf16.msra.mxu0 %v3694_v54 }
 0x8b0   :  { %3420 = vmatprep.subr.bf16.mxu0 %v4099_v0 }
 0x8b2   :  { %3417 = vmatmul.mubr.msk.bf16.vlgmr.msra.gmra.mxu0 %vm208_vm1, %v4398_v3 }
 0x8b3   :  { %3421 = vmatpush3.bf16.msra.mxu0 %v3695_v55  ;;  %3424 = vmatprep.mubr.msk.bf16.mxu0 %vm4100_vm0, %v4099_v0  ;;  %v3701_v55 = vld [vmem:[%s4816_s2 + $0x38] sm:$0xff]  }
 0x8b4   :  { %3422 = vmatprep.subr.bf16.mxu0 %v4099_v0  ;;  %3461 = vmatpush3.bf16.msra.mxu1 %v3701_v55 }
 0x8b5   :  { %3462 = vmatprep.subr.bf16.mxu1 %v4099_v0 }
 0x8b7   :  { %3423 = vmatpush3.bf16.msra.mxu0 %v3696_v56  ;;  %v3702_v56 = vld [vmem:[%s4816_s2 + $0x30] sm:$0xff]  }
 0x8b8   :  { %3436 = vmatprep.subr.bf16.mxu0 %v4099_v0  ;;  %3463 = vmatpush3.bf16.msra.mxu1 %v3702_v56 }
 0x8b9   :  { %3464 = vmatprep.subr.bf16.mxu1 %v4099_v0 }
 0x8ba   :  { %3425 = vmatmul.mubr.msk.bf16.vlgmr.msra.gmra.mxu0 %vm208_vm1, %v1183_v52 }
 0x8bb   :  { %3437 = vmatpush3.bf16.msra.mxu0 %v3697_v57  ;;  %3440 = vmatprep.mubr.msk.bf16.mxu0 %vm4100_vm0, %v4099_v0  ;;  %v3703_v57 = vld [vmem:[%s4816_s2 + $0x28] sm:$0xff]  }
 0x8bc   :  { %3438 = vmatprep.subr.bf16.mxu0 %v4099_v0  ;;  %3465 = vmatpush3.bf16.msra.mxu1 %v3703_v57 }
 0x8bd   :  { %3466 = vmatprep.subr.bf16.mxu1 %v4099_v0 }
 0x8bf   :  { %3439 = vmatpush3.bf16.msra.mxu0 %v3698_v58  ;;  %v3704_v58 = vld [vmem:[%s4816_s2 + $0x20] sm:$0xff]  }
 0x8c0   :  { %3452 = vmatprep.subr.bf16.mxu0 %v4099_v0  ;;  %3467 = vmatpush3.bf16.msra.mxu1 %v3704_v58 }
 0x8c1   :  { %3468 = vmatprep.subr.bf16.mxu1 %v4099_v0 }
 0x8c2   :  { %3441 = vmatmul.mubr.msk.bf16.vlgmr.msra.gmra.mxu0 %vm208_vm1, %v4398_v3 }
 0x8c3   :  { %3456 = vmatprep.mubr.msk.bf16.mxu0 %vm4100_vm0, %v4099_v0  ;;  %3453 = vmatpush3.bf16.msra.mxu0 %v3699_v59 }
 0x8c4   :  { %3454 = vmatprep.subr.bf16.mxu0 %v4099_v0 }
 0x8c7   :  { %3455 = vmatpush3.bf16.msra.mxu0 %v3700_v60 }
 0x8c8   :  { %3480 = vmatprep.subr.bf16.mxu0 %v4099_v0 }
 0x96a   :  { %v1238_v61 = vpop.f32.mrf.mxu0  ;;  %v1539_v62 = vpop.f32.mrf.mxu1 }
 0x96b   :  { %v1239_v9 = vadd.f32 %v1238_v61, %v1188_v4  ;;  %v1540_v39 = vadd.f32 %v3015_v36, %v1539_v62  ;;  %v3706_v4 = vld [vmem:[%s4816_s2 + $0x10] sm:$0xff]   ;;  %v3718_v36 = vld [vmem:[%s4824_s10] sm:$0xff]  }
 0x96c   :  { %v3410_v63 = vpop.f32.mrf.mxu0  ;;  %v3450_v1 = vpop.f32.mrf.mxu1 }
 0x96d   :  { %v3705_v1 = vld [vmem:[%s4816_s2 + $0x18] sm:$0xff]  }
 0x96e   :  { %v1241_v3 = vpop.f32.mrf.mxu0  ;;  %v1542_v5 = vpop.f32.mrf.mxu1  ;;  %3469 = vmatpush3.bf16.msra.mxu1 %v3705_v1  ;;  %v2035_v1 = vld [vmem:[#allocation19 + $0x1] sm:$0x1] }
 0x96f   :  { %3470 = vmatprep.subr.bf16.mxu1 %v4099_v0  ;;  %v3707_v3 = vld [vmem:[%s4816_s2 + $0x8] sm:$0xff]   ;;  %v3708_v5 = vld [vmem:[%s4816_s2] sm:$0xff]  }
 0x970   :  { %v3411_v8 = vpop.f32.mrf.mxu0  ;;  %v3451_v6 = vpop.f32.mrf.mxu1 }
 0x971   :  { %v3711_v8 = vld [vmem:[#allocation16 + $0x8] sm:$0xff]   ;;  %v3712_v6 = vld [vmem:[#allocation16] sm:$0xff]  }
 0x972   :  { %v1294_v10 = vpop.f32.mrf.mxu0  ;;  %3471 = vmatpush3.bf16.msra.mxu1 %v3706_v4 }
 0x973   :  { %v1300_v12 = vadd.f32 %v1294_v10, %v1239_v9  ;;  %3472 = vmatprep.subr.bf16.mxu1 %v4099_v0 }
 0x974   :  { %v3418_v13 = vpop.f32.mrf.mxu0 }
 0x975   :  { %v1302_v14 = vadd.f32 %v1301_v11, %v1300_v12  ;;  %v3709_v12 = vld [vmem:[%s4824_s10 + $0x18] sm:$0xff]  }
 0x976   :  { %v1297_v15 = vpop.f32.mrf.mxu0  ;;  %3473 = vmatpush3.bf16.msra.mxu1 %v3707_v3 }
 0x977   :  { %v2987_v16 = vmul.f32 -1.442695, %v1302_v14  ;;  %3474 = vmatprep.subr.bf16.mxu1 %v4099_v0  ;;  %v3710_v14 = vld [vmem:[%s4824_s10 + $0x10] sm:$0xff]  }
 0x978   :  { %v3419_v17 = vpop.f32.mrf.mxu0 }
 0x979   :  { %3767 = vpow2.f32 %v2987_v16  ;;  %v3713_v16 = vld [vmem:[%s4823_s9 + $0x8] sm:$0xff]  }
 0x97a   :  { %v1360_v19 = vpop.f32.mrf.mxu0  ;;  %3475 = vmatpush3.bf16.msra.mxu1 %v3708_v5 }
 0x97b   :  { %v1361_v20 = vadd.f32 %v2992_v18, %v1360_v19  ;;  %3512 = vmatprep.subr.bf16.mxu1 %v4099_v0 }
 0x97c   :  { %v3426_v22 = vpop.f32.mrf.mxu0 }
 0x97d   :  { %v1422_v7 = vadd.f32 %v4461_v38, %v1361_v20 }
 0x97e   :  { %v1363_v23 = vpop.f32.mrf.mxu0 }
 0x97f   :  { %v1424_v24 = vadd.f32 %v1423_v21, %v1422_v7 }
 0x980   :  { %v3427_v25 = vpop.f32.mrf.mxu0 }
 0x981   :  { %v3003_v26 = vmul.f32 -1.442695, %v1424_v24  ;;  %v3714_v24 = vld [vmem:[%s4823_s9 + $0x28] sm:$0xff]   ;;  %v3715_v25 = vld [vmem:[%s4823_s9] sm:$0xff]  }
 0x982   :  { %v1482_v27 = vpop.f32.mrf.mxu0 }
 0x983   :  { %3769 = vpow2.f32 %v3003_v26  ;;  %v1483_v37 = vadd.f32 %v1482_v27, %v1435_v34  ;;  %v3716_v26 = vld [vmem:[%s4823_s9 + $0x20] sm:$0xff]   ;;  %v1732_v27 = vld [vmem:[#allocation4 + $0x2] sm:$0x1] }
 0x984   :  { %v3442_v28 = vpop.f32.mrf.mxu0 }
 0x986   :  { %v3768_v29 = vpop.eup %3767  ;;  %v1485_v30 = vpop.f32.mrf.mxu0 }
 0x987   :  { %v1306_v31 = vadd.f32 1.0, %v3768_v29 }
 0x988   :  { %v3443_v32 = vpop.f32.mrf.mxu0 }
 0x989   :  { %3771 = vrcp.f32 %v1306_v31 }
 0x990   :  { %v3770_v33 = vpop.eup %3769 }
 0x991   :  { %v1428_v35 = vadd.f32 1.0, %v3770_v33  ;;  %v3717_v33 = vld [vmem:[%s4824_s10 + $0x8] sm:$0xff]  }
 0x993   :  { %3773 = vrcp.f32 %v1428_v35 }
 0x996   :  { %v3772_v38 = vpop.eup %3771 }
 0x997   :  { %v1545_v40 = vmul.f32 %v3772_v38, %v1483_v37  ;;  %v3719_v37 = vld [vmem:[%s4823_s9 + $0x18] sm:$0xff]   ;;  %v3720_v38 = vld [vmem:[%s4823_s9 + $0x10] sm:$0xff]  }
 0x999   :  { %v1546_v41 = vadd.f32 %v1545_v40, %v1540_v39  ;;  %v3721_v39 = vld [vmem:[%s4824_s10 + $0x28] sm:$0xff]   ;;  %v3722_v40 = vld [vmem:[%s4824_s10 + $0x20] sm:$0xff]  }
 0x99b   :  { %3775 = vtanh.f32 %v1546_v41  ;;  %v3723_v41 = vld [vmem:[#allocation11 + $0x8] sm:$0xff]  }
 0x9a0   :  { %v3774_v42 = vpop.eup %3773 }
 0x9a1   :  { %v1548_v43 = vsub.f32 1.0, %v3774_v42  ;;  %v1550_v46 = vmul.f32 %v3774_v42, %v4392_v2  ;;  %v3724_v42 = vld [vmem:[#allocation11] sm:$0xff]  }
 0x9a8   :  { %v3776_v44 = vpop.eup %3775 }
 0x9a9   :  { %v1549_v45 = vmul.f32 %v3776_v44, %v1548_v43 }
 0x9ab   :  { %v4529_v47 = vadd.f32 %v1550_v46, %v1549_v45 }
 0x9ad   :  { %1552 = vst.msk [vmem:[#allocation2 + $0x1] sm:$0x1] %vm939_vm4, %v4529_v47  ;;  %v4535_v48 = vpack.c.bf16 %v4529_v47, %v4529_v47 }
 0x9af   :  { %3457 = vmatmul.mubr.msk.bf16.vlgmr.msra.gmra.mxu0 %vm208_vm1, %v4535_v48 }
 0x9b0   :  { %3484 = vmatprep.mubr.msk.bf16.mxu0 %vm4100_vm0, %v4099_v0  ;;  %3481 = vmatpush3.bf16.msra.mxu0 %v3711_v8 }
 0x9b1   :  { %3482 = vmatprep.subr.bf16.mxu0 %v4099_v0 }
 0x9b4   :  { %3483 = vmatpush3.bf16.msra.mxu0 %v3712_v6 }
 0x9b5   :  { %3488 = vmatprep.subr.bf16.mxu0 %v4099_v0 }
 0xa6f   :  { %v1608_v50 = vpop.f32.mrf.mxu0 }
 0xa70   :  { %v1614_v51 = vadd.f32 %v1608_v50, %v1554_v49  ;;  %v1800_v49 = vld [vmem:[%s4825_s11] sm:$0x1] }
 0xa71   :  { %v3458_v52 = vpop.f32.mrf.mxu0 }
 0xa72   :  { %v1615_v2 = vsel %vm381_vm2, %v1614_v51, -inf }
 0xa73   :  { %1616 = vmax.xlane.f32.xlu0 %v1615_v2  ;;  %v1611_v53 = vpop.f32.mrf.mxu0 }
 0xa75   :  { %v3459_v54 = vpop.f32.mrf.mxu0 }
 0xa76   :  { %v1913_v54 = vld [vmem:[#allocation19] sm:$0x1] }
 0xafc   :  { %v1617_v59 = vpop.xlane.xlu0 %1616 }
 0xafd   :  { %v1618_v60 = vsub.f32 %v1614_v51, %v1617_v59 }
 0xaff   :  { %v1619_v61 = vmul.f32 1.442695, %v1618_v60 }
 0xb01   :  { %3777 = vpow2.f32 %v1619_v61  ;;  %v3044_v61 = vld [vmem:[%s4825_s11 + $0x1] sm:$0x1] }
 0xb0e   :  { %v3778_v62 = vpop.eup %3777 }
 0xb0f   :  { %v1621_v63 = vsel %vm381_vm2, %v3778_v62, 0.0 }
 0xb10   :  { %1622 = vadd.xlane.f32.xlu1 %v1621_v63 }
 0xb99   :  { %v1623_v9 = vpop.xlane.xlu1 %1622 }
 0xb9a   :  { %3779 = vrcp.f32 %v1623_v9 }
 0xba7   :  { %v3780_v10 = vpop.eup %3779 }
 0xba8   :  { %v1625_v11 = vmul.f32 %v3780_v10, %v3778_v62 }
 0xbaa   :  { %1626 = vst [vmem:[#allocation25 + $0x2] sm:$0x1] %v1625_v11  ;;  %v1627_v13 = vpack.c.bf16 %v1625_v11, %v1625_v11 }
 0xbac   :  { %3477 = vmatmul.mubr.bf16.vlgmr.msra.gmra.mxu1 %v1627_v13 }
 0xbad   :  { %3513 = vmatpush3.bf16.msra.mxu1 %v3709_v12  ;;  %3516 = vmatprep.mubr.msk.bf16.mxu1 %vm4100_vm0, %v4099_v0 }
 0xbae   :  { %3514 = vmatprep.subr.bf16.mxu1 %v4099_v0 }
 0xbb1   :  { %3515 = vmatpush3.bf16.msra.mxu1 %v3710_v14 }
 0xbb2   :  { %3528 = vmatprep.subr.bf16.mxu1 %v4099_v0 }
 0xbb4   :  { %3517 = vmatmul.mubr.msk.bf16.vlgmr.msra.gmra.mxu1 %vm208_vm1, %v4535_v48 }
 0xbb5   :  { %3532 = vmatprep.mubr.msk.bf16.mxu1 %vm4100_vm0, %v4099_v0  ;;  %3529 = vmatpush3.bf16.msra.mxu1 %v3714_v24 }
 0xbb6   :  { %3530 = vmatprep.subr.bf16.mxu1 %v4099_v0 }
 0xbb9   :  { %3531 = vmatpush3.bf16.msra.mxu1 %v3716_v26 }
 0xbba   :  { %3544 = vmatprep.subr.bf16.mxu1 %v4099_v0 }
 0xc6c   :  { %v1726_v15 = vpop.f32.mrf.mxu1 }
 0xc6d   :  { %v1733_v17 = vpack.c.bf16 %v1726_v15, %v1726_v15 }
 0xc6e   :  { %v3478_v18 = vpop.f32.mrf.mxu1 }
 0xc6f   :  { %3485 = vmatmul.mubr.msk.bf16.vlgmr.msra.gmra.mxu0 %vm208_vm1, %v1733_v17  ;;  %v2047_v17 = vld [vmem:[#allocation19 + $0x2] sm:$0x1] }
 0xc70   :  { %v1729_v19 = vpop.f32.mrf.mxu1  ;;  %3489 = vmatpush3.bf16.msra.mxu0 %v3713_v16  ;;  %3492 = vmatprep.mubr.msk.bf16.mxu0 %vm4100_vm0, %v4099_v0 }
 0xc71   :  { %3490 = vmatprep.subr.bf16.mxu0 %v4099_v0  ;;  %v3067_v19 = vld [vmem:[%s4825_s11 + $0x2] sm:$0x1] }
 0xc72   :  { %v3479_v20 = vpop.f32.mrf.mxu1 }
 0xc74   :  { %v4598_v21 = vpop.f32.mrf.mxu1  ;;  %3491 = vmatpush3.bf16.msra.mxu0 %v3715_v25 }
 0xc75   :  { %3496 = vmatprep.subr.bf16.mxu0 %v4099_v0 }
 0xc76   :  { %v3518_v22 = vpop.f32.mrf.mxu1 }
 0xc78   :  { %v2031_v7 = vpop.f32.mrf.mxu1 }
 0xc7a   :  { %v3519_v23 = vpop.f32.mrf.mxu1 }
 0xd2f   :  { %v1787_v28 = vpop.f32.mrf.mxu0 }
 0xd30   :  { %v1793_v29 = vadd.f32 %v1787_v28, %v1732_v27 }
 0xd31   :  { %v3486_v30 = vpop.f32.mrf.mxu0 }
 0xd32   :  { %v1794_v31 = vmax.f32 %v1793_v29, 0.0 }
 0xd33   :  { %v1790_v32 = vpop.f32.mrf.mxu0 }
 0xd34   :  { %v1795_v34 = vpack.c.bf16 %v1794_v31, %v1794_v31  ;;  %v2166_v31 = vld [vmem:[#allocation3 + $0x3] sm:$0x1] }
 0xd35   :  { %v3487_v35 = vpop.f32.mrf.mxu0 }
 0xd36   :  { %3493 = vmatmul.mubr.msk.bf16.vlgmr.msra.gmra.mxu0 %vm208_vm1, %v1795_v34  ;;  %3533 = vmatmul.mubr.msk.bf16.vlgmr.msra.gmra.mxu1 %vm208_vm1, %v1795_v34 }
 0xd37   :  { %3497 = vmatpush3.bf16.msra.mxu0 %v3717_v33  ;;  %3500 = vmatprep.mubr.msk.bf16.mxu0 %vm4100_vm0, %v4099_v0 }
 0xd38   :  { %3498 = vmatprep.subr.bf16.mxu0 %v4099_v0  ;;  %3560 = vmatprep.mubr.msk.bf16.mxu1 %vm4100_vm0, %v4099_v0 }
 0xd3b   :  { %3499 = vmatpush3.bf16.msra.mxu0 %v3718_v36 }
 0xd3c   :  { %3504 = vmatprep.subr.bf16.mxu0 %v4099_v0 }
 0xd3e   :  { %3501 = vmatmul.mubr.msk.bf16.vlgmr.msra.gmra.mxu0 %vm208_vm1, %v4535_v48 }
 0xd3f   :  { %3505 = vmatpush3.bf16.msra.mxu0 %v3719_v37  ;;  %3508 = vmatprep.mubr.msk.bf16.mxu0 %vm4100_vm0, %v4099_v0  ;;  %v3725_v37 = vld [vmem:[%s4816_s2 + $0x38] sm:$0xff]  }
 0xd40   :  { %3506 = vmatprep.subr.bf16.mxu0 %v4099_v0  ;;  %3545 = vmatpush3.bf16.msra.mxu1 %v3725_v37 }
 0xd41   :  { %3546 = vmatprep.subr.bf16.mxu1 %v4099_v0 }
 0xd43   :  { %3507 = vmatpush3.bf16.msra.mxu0 %v3720_v38  ;;  %v3726_v38 = vld [vmem:[%s4816_s2 + $0x30] sm:$0xff]  }
 0xd44   :  { %3520 = vmatprep.subr.bf16.mxu0 %v4099_v0  ;;  %3547 = vmatpush3.bf16.msra.mxu1 %v3726_v38 }
 0xd45   :  { %3548 = vmatprep.subr.bf16.mxu1 %v4099_v0 }
 0xd46   :  { %3509 = vmatmul.mubr.msk.bf16.vlgmr.msra.gmra.mxu0 %vm208_vm1, %v1795_v34 }
 0xd47   :  { %3521 = vmatpush3.bf16.msra.mxu0 %v3721_v39  ;;  %3524 = vmatprep.mubr.msk.bf16.mxu0 %vm4100_vm0, %v4099_v0  ;;  %v3727_v39 = vld [vmem:[%s4816_s2 + $0x28] sm:$0xff]  }
 0xd48   :  { %3522 = vmatprep.subr.bf16.mxu0 %v4099_v0  ;;  %3549 = vmatpush3.bf16.msra.mxu1 %v3727_v39 }
 0xd49   :  { %3550 = vmatprep.subr.bf16.mxu1 %v4099_v0 }
 0xd4b   :  { %3523 = vmatpush3.bf16.msra.mxu0 %v3722_v40  ;;  %v3728_v40 = vld [vmem:[%s4816_s2 + $0x20] sm:$0xff]  }
 0xd4c   :  { %3536 = vmatprep.subr.bf16.mxu0 %v4099_v0  ;;  %3551 = vmatpush3.bf16.msra.mxu1 %v3728_v40 }
 0xd4d   :  { %3552 = vmatprep.subr.bf16.mxu1 %v4099_v0 }
 0xd4e   :  { %3525 = vmatmul.mubr.msk.bf16.vlgmr.msra.gmra.mxu0 %vm208_vm1, %v4535_v48 }
 0xd4f   :  { %3540 = vmatprep.mubr.msk.bf16.mxu0 %vm4100_vm0, %v4099_v0  ;;  %3537 = vmatpush3.bf16.msra.mxu0 %v3723_v41 }
 0xd50   :  { %3538 = vmatprep.subr.bf16.mxu0 %v4099_v0 }
 0xd53   :  { %3539 = vmatpush3.bf16.msra.mxu0 %v3724_v42 }
 0xd54   :  { %3564 = vmatprep.subr.bf16.mxu0 %v4099_v0 }
 0xdf6   :  { %v1850_v43 = vpop.f32.mrf.mxu0  ;;  %v2151_v44 = vpop.f32.mrf.mxu1 }
 0xdf7   :  { %v1851_v2 = vadd.f32 %v1850_v43, %v1800_v49  ;;  %v2152_v22 = vadd.f32 %v3067_v19, %v2151_v44  ;;  %v3730_v49 = vld [vmem:[%s4816_s2 + $0x10] sm:$0xff]   ;;  %v3742_v19 = vld [vmem:[%s4824_s10] sm:$0xff]  }
 0xdf8   :  { %v3494_v45 = vpop.f32.mrf.mxu0  ;;  %v3534_v46 = vpop.f32.mrf.mxu1 }
 0xdf9   :  { %v3729_v46 = vld [vmem:[%s4816_s2 + $0x18] sm:$0xff]  }
 0xdfa   :  { %v1853_v48 = vpop.f32.mrf.mxu0  ;;  %v2154_v50 = vpop.f32.mrf.mxu1  ;;  %3553 = vmatpush3.bf16.msra.mxu1 %v3729_v46 }
 0xdfb   :  { %3554 = vmatprep.subr.bf16.mxu1 %v4099_v0  ;;  %v3731_v48 = vld [vmem:[%s4816_s2 + $0x8] sm:$0xff]   ;;  %v3732_v50 = vld [vmem:[%s4816_s2] sm:$0xff]  }
 0xdfc   :  { %v3495_v51 = vpop.f32.mrf.mxu0  ;;  %v3535_v52 = vpop.f32.mrf.mxu1 }
 0xdfd   :  { %v3735_v51 = vld [vmem:[#allocation16 + $0x8] sm:$0xff]   ;;  %v3736_v52 = vld [vmem:[#allocation16] sm:$0xff]  }
 0xdfe   :  { %v1906_v53 = vpop.f32.mrf.mxu0  ;;  %3555 = vmatpush3.bf16.msra.mxu1 %v3730_v49 }
 0xdff   :  { %v1912_v55 = vadd.f32 %v1906_v53, %v1851_v2  ;;  %3556 = vmatprep.subr.bf16.mxu1 %v4099_v0 }
 0xe00   :  { %v3502_v56 = vpop.f32.mrf.mxu0 }
 0xe01   :  { %v1914_v57 = vadd.f32 %v1913_v54, %v1912_v55  ;;  %v3733_v55 = vld [vmem:[%s4824_s10 + $0x18] sm:$0xff]  }
 0xe02   :  { %v1909_v58 = vpop.f32.mrf.mxu0  ;;  %3557 = vmatpush3.bf16.msra.mxu1 %v3731_v48 }
 0xe03   :  { %v3039_v59 = vmul.f32 -1.442695, %v1914_v57  ;;  %3558 = vmatprep.subr.bf16.mxu1 %v4099_v0  ;;  %v3734_v57 = vld [vmem:[%s4824_s10 + $0x10] sm:$0xff]  }
 0xe04   :  { %v3503_v60 = vpop.f32.mrf.mxu0 }
 0xe05   :  { %3781 = vpow2.f32 %v3039_v59  ;;  %v3737_v59 = vld [vmem:[%s4823_s9 + $0x8] sm:$0xff]  }
 0xe06   :  { %v1972_v62 = vpop.f32.mrf.mxu0  ;;  %3559 = vmatpush3.bf16.msra.mxu1 %v3732_v50 }
 0xe07   :  { %v1973_v63 = vadd.f32 %v3044_v61, %v1972_v62  ;;  %3596 = vmatprep.subr.bf16.mxu1 %v4099_v0 }
 0xe08   :  { %v3510_v4 = vpop.f32.mrf.mxu0 }
 0xe09   :  { %v2034_v3 = vadd.f32 %v4598_v21, %v1973_v63 }
 0xe0a   :  { %v1975_v5 = vpop.f32.mrf.mxu0 }
 0xe0b   :  { %v2036_v8 = vadd.f32 %v2035_v1, %v2034_v3 }
 0xe0c   :  { %v3511_v6 = vpop.f32.mrf.mxu0 }
 0xe0d   :  { %v3055_v9 = vmul.f32 -1.442695, %v2036_v8  ;;  %v3738_v8 = vld [vmem:[%s4823_s9 + $0x28] sm:$0xff]   ;;  %v3739_v6 = vld [vmem:[%s4823_s9] sm:$0xff]  }
 0xe0e   :  { %v2094_v10 = vpop.f32.mrf.mxu0 }
 0xe0f   :  { %3783 = vpow2.f32 %v3055_v9  ;;  %v2095_v20 = vadd.f32 %v2094_v10, %v2047_v17  ;;  %v3740_v9 = vld [vmem:[%s4823_s9 + $0x20] sm:$0xff]   ;;  %v2344_v10 = vld [vmem:[#allocation4 + $0x3] sm:$0x1] }
 0xe10   :  { %v3526_v11 = vpop.f32.mrf.mxu0 }
 0xe12   :  { %v3782_v12 = vpop.eup %3781  ;;  %v2097_v13 = vpop.f32.mrf.mxu0 }
 0xe13   :  { %v1918_v14 = vadd.f32 1.0, %v3782_v12 }
 0xe14   :  { %v3527_v15 = vpop.f32.mrf.mxu0 }
 0xe15   :  { %3785 = vrcp.f32 %v1918_v14 }
 0xe1c   :  { %v3784_v16 = vpop.eup %3783 }
 0xe1d   :  { %v2040_v18 = vadd.f32 1.0, %v3784_v16  ;;  %v3741_v16 = vld [vmem:[%s4824_s10 + $0x8] sm:$0xff]  }
 0xe1f   :  { %3787 = vrcp.f32 %v2040_v18 }
 0xe22   :  { %v3786_v21 = vpop.eup %3785 }
 0xe23   :  { %v2157_v7 = vmul.f32 %v3786_v21, %v2095_v20  ;;  %v3743_v20 = vld [vmem:[%s4823_s9 + $0x18] sm:$0xff]   ;;  %v3744_v21 = vld [vmem:[%s4823_s9 + $0x10] sm:$0xff]  }
 0xe25   :  { %v2158_v23 = vadd.f32 %v2157_v7, %v2152_v22  ;;  %v3745_v22 = vld [vmem:[%s4824_s10 + $0x28] sm:$0xff]   ;;  %v3746_v7 = vld [vmem:[%s4824_s10 + $0x20] sm:$0xff]  }
 0xe27   :  { %3789 = vtanh.f32 %v2158_v23  ;;  %v3747_v23 = vld [vmem:[#allocation20 + $0x8] sm:$0xff]  }
 0xe2c   :  { %v3788_v24 = vpop.eup %3787 }
 0xe2d   :  { %v2160_v25 = vsub.f32 1.0, %v3788_v24  ;;  %v2162_v28 = vmul.f32 %v3788_v24, %v4529_v47  ;;  %v3748_v24 = vld [vmem:[#allocation20] sm:$0xff]  }
 0xe34   :  { %v3790_v26 = vpop.eup %3789 }
 0xe35   :  { %v2161_v27 = vmul.f32 %v3790_v26, %v2160_v25 }
 0xe37   :  { %v4666_v29 = vadd.f32 %v2162_v28, %v2161_v27 }
 0xe39   :  { %2164 = vst.msk [vmem:[#allocation2 + $0x2] sm:$0x1] %vm939_vm4, %v4666_v29  ;;  %v4672_v30 = vpack.c.bf16 %v4666_v29, %v4666_v29 }
 0xe3b   :  { %3541 = vmatmul.mubr.msk.bf16.vlgmr.msra.gmra.mxu0 %vm208_vm1, %v4672_v30 }
 0xe3c   :  { %3568 = vmatprep.mubr.msk.bf16.mxu0 %vm4100_vm0, %v4099_v0  ;;  %3565 = vmatpush3.bf16.msra.mxu0 %v3735_v51 }
 0xe3d   :  { %3566 = vmatprep.subr.bf16.mxu0 %v4099_v0 }
 0xe40   :  { %3567 = vmatpush3.bf16.msra.mxu0 %v3736_v52 }
 0xe41   :  { %3572 = vmatprep.subr.bf16.mxu0 %v4099_v0 }
 0xefb   :  { %v2220_v32 = vpop.f32.mrf.mxu0 }
 0xefc   :  { %v2226_v33 = vadd.f32 %v2220_v32, %v2166_v31  ;;  %v2412_v31 = vld [vmem:[%s4825_s11] sm:$0x1] }
 0xefd   :  { %v3542_v34 = vpop.f32.mrf.mxu0 }
 0xefe   :  { %v2227_v47 = vsel %vm381_vm2, %v2226_v33, -inf }
 0xeff   :  { %2228 = vmax.xlane.f32.xlu0 %v2227_v47  ;;  %v2223_v35 = vpop.f32.mrf.mxu0 }
 0xf01   :  { %v3543_v36 = vpop.f32.mrf.mxu0 }
 0xf02   :  { %v2525_v36 = vld [vmem:[#allocation19] sm:$0x1] }
 0xf88   :  { %v2229_v41 = vpop.xlane.xlu0 %2228 }
 0xf89   :  { %v2230_v42 = vsub.f32 %v2226_v33, %v2229_v41 }
 0xf8b   :  { %v2231_v43 = vmul.f32 1.442695, %v2230_v42  ;;  %v3096_v42 = vld [vmem:[%s4825_s11 + $0x1] sm:$0x1] }
 0xf8d   :  { %3791 = vpow2.f32 %v2231_v43 }
 0xf9a   :  { %v3792_v44 = vpop.eup %3791 }
 0xf9b   :  { %v2233_v45 = vsel %vm381_vm2, %v3792_v44, 0.0 }
 0xf9c   :  { %2234 = vadd.xlane.f32.xlu1 %v2233_v45  ;;  %v2647_v45 = vld [vmem:[#allocation19 + $0x1] sm:$0x1] }
0x1025   :  { %v2235_v2 = vpop.xlane.xlu1 %2234 }
0x1026   :  { %3793 = vrcp.f32 %v2235_v2 }
0x1033   :  { %v3794_v53 = vpop.eup %3793 }
0x1034   :  { %v2237_v54 = vmul.f32 %v3794_v53, %v3792_v44 }
0x1036   :  { %2238 = vst [vmem:[#allocation25 + $0x3] sm:$0x1] %v2237_v54  ;;  %v2239_v56 = vpack.c.bf16 %v2237_v54, %v2237_v54 }
0x1038   :  { %3561 = vmatmul.mubr.bf16.vlgmr.msra.gmra.mxu1 %v2239_v56 }
0x1039   :  { %3597 = vmatpush3.bf16.msra.mxu1 %v3733_v55  ;;  %3600 = vmatprep.mubr.msk.bf16.mxu1 %vm4100_vm0, %v4099_v0 }
0x103a   :  { %3598 = vmatprep.subr.bf16.mxu1 %v4099_v0 }
0x103d   :  { %3599 = vmatpush3.bf16.msra.mxu1 %v3734_v57 }
0x103e   :  { %3612 = vmatprep.subr.bf16.mxu1 %v4099_v0 }
0x1040   :  { %3601 = vmatmul.mubr.msk.bf16.vlgmr.msra.gmra.mxu1 %vm208_vm1, %v4672_v30 }
0x1041   :  { %3616 = vmatprep.mubr.msk.bf16.mxu1 %vm4100_vm0, %v4099_v0  ;;  %3613 = vmatpush3.bf16.msra.mxu1 %v3738_v8 }
0x1042   :  { %3614 = vmatprep.subr.bf16.mxu1 %v4099_v0 }
0x1045   :  { %3615 = vmatpush3.bf16.msra.mxu1 %v3740_v9 }
0x10f8   :  { %v2338_v58 = vpop.f32.mrf.mxu1 }
0x10f9   :  { %v2345_v60 = vpack.c.bf16 %v2338_v58, %v2338_v58 }
0x10fa   :  { %v3562_v61 = vpop.f32.mrf.mxu1 }
0x10fb   :  { %3569 = vmatmul.mubr.msk.bf16.vlgmr.msra.gmra.mxu0 %vm208_vm1, %v2345_v60  ;;  %v3119_v61 = vld [vmem:[%s4825_s11 + $0x2] sm:$0x1] }
0x10fc   :  { %v2341_v62 = vpop.f32.mrf.mxu1  ;;  %3573 = vmatpush3.bf16.msra.mxu0 %v3737_v59  ;;  %3576 = vmatprep.mubr.msk.bf16.mxu0 %vm4100_vm0, %v4099_v0  ;;  %v2659_v59 = vld [vmem:[#allocation19 + $0x2] sm:$0x1] }
0x10fd   :  { %3574 = vmatprep.subr.bf16.mxu0 %v4099_v0 }
0x10fe   :  { %v3563_v63 = vpop.f32.mrf.mxu1 }
0x1100   :  { %v4735_v1 = vpop.f32.mrf.mxu1  ;;  %3575 = vmatpush3.bf16.msra.mxu0 %v3739_v6 }
0x1101   :  { %3580 = vmatprep.subr.bf16.mxu0 %v4099_v0 }
0x1102   :  { %v3602_v4 = vpop.f32.mrf.mxu1 }
0x1104   :  { %v2643_v3 = vpop.f32.mrf.mxu1 }
0x1106   :  { %v3603_v5 = vpop.f32.mrf.mxu1 }
0x11bb   :  { %v2399_v11 = vpop.f32.mrf.mxu0 }
0x11bc   :  { %v2405_v12 = vadd.f32 %v2399_v11, %v2344_v10 }
0x11bd   :  { %v3570_v13 = vpop.f32.mrf.mxu0 }
0x11be   :  { %v2406_v14 = vmax.f32 %v2405_v12, 0.0 }
0x11bf   :  { %v2402_v15 = vpop.f32.mrf.mxu0 }
0x11c0   :  { %v2407_v17 = vpack.c.bf16 %v2406_v14, %v2406_v14  ;;  %v3123_v14 = vld [vmem:[%s4828_s14] ss:$0 sm:$0xff]  ;;  %s4013_s14 = scalar_lea.vmem %s2877_s7, 32 }
0x11c1   :  { %v3571_v18 = vpop.f32.mrf.mxu0  ;;  %p4015_p10 = scmp.lt.s32.totalorder %s4013_s14, %s4009_s18 }
0x11c2   :  { %3577 = vmatmul.mubr.msk.bf16.vlgmr.msra.gmra.mxu0 %vm208_vm1, %v2407_v17  ;;  %3617 = vmatmul.mubr.msk.bf16.vlgmr.msra.gmra.mxu1 %vm208_vm1, %v2407_v17 }
0x11c3   :  { %3581 = vmatpush3.bf16.msra.mxu0 %v3741_v16  ;;  %3584 = vmatprep.mubr.msk.bf16.mxu0 %vm4100_vm0, %v4099_v0  ;;  %p4016_p11 = por %p4015_p10, %p4014_p9 }
0x11c4   :  { %3582 = vmatprep.subr.bf16.mxu0 %v4099_v0 }
0x11c5   :  { %p4017_p12 = pnand %p4016_p11, %p4010_p8 }
0x11c7   :  { %3583 = vmatpush3.bf16.msra.mxu0 %v3742_v19 }
0x11c8   :  { %3588 = vmatprep.subr.bf16.mxu0 %v4099_v0 }
0x11ca   :  { %3585 = vmatmul.mubr.msk.bf16.vlgmr.msra.gmra.mxu0 %vm208_vm1, %v4672_v30 }
0x11cb   :  { %3589 = vmatpush3.bf16.msra.mxu0 %v3743_v20  ;;  %3592 = vmatprep.mubr.msk.bf16.mxu0 %vm4100_vm0, %v4099_v0 }
0x11cc   :  { %3590 = vmatprep.subr.bf16.mxu0 %v4099_v0 }
0x11cf   :  { %3591 = vmatpush3.bf16.msra.mxu0 %v3744_v21 }
0x11d0   :  { %3604 = vmatprep.subr.bf16.mxu0 %v4099_v0 }
0x11d2   :  { %3593 = vmatmul.mubr.msk.bf16.vlgmr.msra.gmra.mxu0 %vm208_vm1, %v2407_v17 }
0x11d3   :  { %3605 = vmatpush3.bf16.msra.mxu0 %v3745_v22  ;;  %3608 = vmatprep.mubr.msk.bf16.mxu0 %vm4100_vm0, %v4099_v0 }
0x11d4   :  { %3606 = vmatprep.subr.bf16.mxu0 %v4099_v0 }
0x11d7   :  { %3607 = vmatpush3.bf16.msra.mxu0 %v3746_v7 }
0x11d8   :  { %3620 = vmatprep.subr.bf16.mxu0 %v4099_v0 }
0x11da   :  { %3609 = vmatmul.mubr.msk.bf16.vlgmr.msra.gmra.mxu0 %vm208_vm1, %v4672_v30 }
0x11db   :  { %3624 = vmatprep.mubr.msk.bf16.mxu0 %vm4100_vm0, %v4099_v0  ;;  %3621 = vmatpush3.bf16.msra.mxu0 %v3747_v23 }
0x11dc   :  { %3622 = vmatprep.subr.bf16.mxu0 %v4099_v0 }
0x11df   :  { %3623 = vmatpush3.bf16.msra.mxu0 %v3748_v24 }
0x1282   :  { %v2462_v25 = vpop.f32.mrf.mxu0  ;;  %v2763_v26 = vpop.f32.mrf.mxu1 }
0x1283   :  { %v2463_v47 = vadd.f32 %v2462_v25, %v2412_v31 }
0x1284   :  { %v3578_v27 = vpop.f32.mrf.mxu0  ;;  %v3618_v28 = vpop.f32.mrf.mxu1 }
0x1286   :  { %v2465_v32 = vpop.f32.mrf.mxu0  ;;  %v2766_v33 = vpop.f32.mrf.mxu1 }
0x1288   :  { %v3579_v30 = vpop.f32.mrf.mxu0  ;;  %v3619_v34 = vpop.f32.mrf.mxu1 }
0x128a   :  { %v2518_v35 = vpop.f32.mrf.mxu0 }
0x128b   :  { %v2524_v37 = vadd.f32 %v2518_v35, %v2463_v47 }
0x128c   :  { %v3586_v38 = vpop.f32.mrf.mxu0 }
0x128d   :  { %v2526_v39 = vadd.f32 %v2525_v36, %v2524_v37 }
0x128e   :  { %v2521_v0 = vpop.f32.mrf.mxu0 }
0x128f   :  { %v3091_v40 = vmul.f32 -1.442695, %v2526_v39 }
0x1290   :  { %v3587_v41 = vpop.f32.mrf.mxu0 }
0x1291   :  { %3795 = vpow2.f32 %v3091_v40 }
0x1292   :  { %v2584_v43 = vpop.f32.mrf.mxu0 }
0x1293   :  { %v2585_v44 = vadd.f32 %v3096_v42, %v2584_v43 }
0x1294   :  { %v3594_v46 = vpop.f32.mrf.mxu0 }
0x1295   :  { %v2646_v49 = vadd.f32 %v4735_v1, %v2585_v44  ;;  %v2764_v1 = vadd.f32 %v3119_v61, %v2763_v26 }
0x1296   :  { %v2587_v48 = vpop.f32.mrf.mxu0 }
0x1297   :  { %v2648_v50 = vadd.f32 %v2647_v45, %v2646_v49 }
0x1298   :  { %v3595_v51 = vpop.f32.mrf.mxu0 }
0x1299   :  { %v3107_v52 = vmul.f32 -1.442695, %v2648_v50 }
0x129a   :  { %v2706_v2 = vpop.f32.mrf.mxu0 }
0x129b   :  { %3797 = vpow2.f32 %v3107_v52  ;;  %v2707_v62 = vadd.f32 %v2706_v2, %v2659_v59 }
0x129c   :  { %v3610_v53 = vpop.f32.mrf.mxu0 }
0x129e   :  { %v3796_v54 = vpop.eup %3795  ;;  %v2709_v55 = vpop.f32.mrf.mxu0 }
0x129f   :  { %v2530_v56 = vadd.f32 1.0, %v3796_v54 }
0x12a0   :  { %v3611_v57 = vpop.f32.mrf.mxu0 }
0x12a1   :  { %3799 = vrcp.f32 %v2530_v56 }
0x12a8   :  { %v3798_v58 = vpop.eup %3797 }
0x12a9   :  { %v2652_v60 = vadd.f32 1.0, %v3798_v58 }
0x12ab   :  { %3801 = vrcp.f32 %v2652_v60 }
0x12ae   :  { %v3800_v63 = vpop.eup %3799 }
0x12af   :  { %v2769_v4 = vmul.f32 %v3800_v63, %v2707_v62 }
0x12b1   :  { %v2770_v3 = vadd.f32 %v2769_v4, %v2764_v1 }
0x12b3   :  { %3803 = vtanh.f32 %v2770_v3 }
0x12b8   :  { %v3802_v5 = vpop.eup %3801 }
0x12b9   :  { %v2772_v8 = vsub.f32 1.0, %v3802_v5  ;;  %v2774_v10 = vmul.f32 %v3802_v5, %v4666_v29 }
0x12c0   :  { %v3804_v6 = vpop.eup %3803 }
0x12c1   :  { %v2773_v9 = vmul.f32 %v3804_v6, %v2772_v8 }
0x12c3   :  { %v2775_v11 = vadd.f32 %v2774_v10, %v2773_v9 }
0x12c5   :  { %2776 = vst.msk [vmem:[#allocation2 + $0x3] sm:$0x1] %vm939_vm4, %v2775_v11  ;;  %2777 = vst.msk [vmem:[#allocation23] sm:$0x1] %vm939_vm4, %v2775_v11 }
0x12cc   :  { %v2778_v12 = vld [vmem:[#allocation2] sm:$0xf] }
0x12cd   :  { %v2779_v13 = vpack.c.bf16 %v2778_v12, %v2778_v12 }
0x12cf   :  { %3625 = vmatmul.mubr.msk.bf16.vlgmr.msra.gmra.mxu0 %vm208_vm1, %v2779_v13 }
0x138f   :  { %v2840_v15 = vpop.f32.mrf.mxu0 }
0x1390   :  { %v2841_v16 = vadd.f32 %v3123_v14, %v2840_v15 }
0x1391   :  { %v3626_v17 = vpop.f32.mrf.mxu0 }
0x1392   :  { %v2847_v18 = vsel %vm2846_vm5, %v2841_v16, -inf }
0x1393   :  { %2848 = vmax.xlane.f32.xlu0 %v2847_v18  ;;  %v2843_v29 = vpop.f32.mrf.mxu0 }
0x1395   :  { %v3627_v19 = vpop.f32.mrf.mxu0 }
0x141c   :  { %v2849_v20 = vpop.xlane.xlu0 %2848 }
0x141d   :  { %v2850_v21 = vsub.f32 %v2841_v16, %v2849_v20 }
0x141f   :  { %v2851_v22 = vmul.f32 1.442695, %v2850_v21 }
0x1421   :  { %3805 = vpow2.f32 %v2851_v22 }
0x142e   :  { %v3806_v7 = vpop.eup %3805 }
0x142f   :  { %v2853_v23 = vsel %vm2846_vm5, %v3806_v7, 0.0 }
0x1430   :  { %2854 = vadd.xlane.f32.xlu1 %v2853_v23 }
0x1431   :  { %4020 = shalt.err (!%p4017_p12)
}
0x1432   :  { %2879 = dma.vmem_to_hbm [thread:$0]  %s2877_s7, 16, %s4830_s16, [#allocation24]  }
0x1433   :  { %s4102_s21 = smov [#allocation25]  }
0x1434   :  { %s2886_s22 = sshll.u32 %s4102_s21, 4  ;;  %s2887_s22 = int_to_ptr.vmem [resolvable:$true] %s2886_s22 }
0x1435   :  { %s4029_s19 = scalar_lea.vmem %s2887_s22, 64  ;;  %p4034_p0 = scmp.lt.s32.totalorder %s2887_s22, %s2887_s22 }
0x1436   :  { %p4030_p13 = scmp.ne.s32.totalorder %s2887_s22, %s4029_s19  ;;  %p4035_p1 = scmp.lt.s32.totalorder %s4029_s19, %s4029_s19 }
0x1438   :  { %p4036_p2 = por %p4035_p1, %p4034_p0 }
0x143a   :  { %p4037_p3 = pnand %p4036_p2, %p4030_p13 }
0x143c   :  { %4040 = shalt.err (!%p4037_p3)
}
0x143d   :  { %2889 = dma.vmem_to_hbm [thread:$0]  %s2887_s22, 64, %s4831_s17, [#allocation24]  }
0x143e   :  { %s4103_s6 = smov [#allocation22]  }
0x143f   :  { %s2866_s1 = sshll.u32 %s4103_s6, 4  ;;  %s2867_s1 = int_to_ptr.vmem [resolvable:$true] %s2866_s1 }
0x1440   :  { %s4049_s16 = scalar_lea.vmem %s2867_s1, 64  ;;  %p4054_p5 = scmp.lt.s32.totalorder %s2867_s1, %s2867_s1 }
0x1441   :  { %p4050_p4 = scmp.ne.s32.totalorder %s2867_s1, %s4049_s16  ;;  %p4055_p6 = scmp.lt.s32.totalorder %s4049_s16, %s4049_s16 }
0x1443   :  { %p4056_p7 = por %p4055_p6, %p4054_p5 }
0x1445   :  { %p4057_p8 = pnand %p4056_p7, %p4050_p4 }
0x14b9   :  { %v2855_v24 = vpop.xlane.xlu1 %2854 }
0x14ba   :  { %3807 = vlog2.f32 %v2855_v24 }
0x14c7   :  { %v3808_v25 = vpop.eup %3807 }
0x14c8   :  { %v2857_v26 = vmul.f32 0.6931472, %v3808_v25 }
0x14ca   :  { %v2858_v27 = vsub.f32 %v2850_v21, %v2857_v26 }
0x14cc   :  { %2859 = vst [vmem:[#allocation22] sm:$0xf] %v2858_v27 }
0x14cd   :  { %4060 = shalt.err (!%p4057_p8)
}
0x14ce   :  { %2869 = dma.vmem_to_hbm [thread:$0]  %s2867_s1, 64, %s4829_s15, [#allocation7]  }
0x14cf   :  { %4081 = dma.done.wait [#allocation7], 64  }
0x14d0   :  { %4082 = vsyncadd [#allocation7], 4294967232 }
0x14d1   :  { %4083 = dma.done.wait [#allocation24], 80  }
0x14d2   :  { %4084 = vsyncadd [#allocation24], 4294967216 }
0x14d3   :  { %2899 = vsyncpa [#allocation6], 1 }
0x14d4   :  { %2900 = vsyncpa [#allocation9], 1 }
0x14d5   :  { %2901 = vsyncpa [#allocation12], 1 }
0x14d6   :  { %2902 = vsyncpa [#allocation15], 1 }
0x14d7   :  { %2903 = vsyncpa [#allocation18], 1 }
0x14d8   :  { %2904 = vsyncpa [#allocation21], 1 }
0x14d9   :  { %2905 = vsyncpa [#allocation7], 1 }
0x14da   :  { %2906 = vsyncpa [#allocation24], 1 }

</bundles_post_ra>
